<compile_context>
chip_gen: v6e
topology: v6e:2x2x1
jax: 0.10.0
libtpu: 0.0.40
codegen_flags: <defaults>
</compile_context>

<pallas_src>
import functools

import jax
import jax.numpy as jnp
from jax.experimental import pallas as pl
from jax.experimental.pallas import tpu as pltpu

# ----------------------------- config (small shapes) -----------------------------
B, F, M, J, C_IN = 2, 8, 4, 8, 2          # x: (B, F, M, J, C)
CHANNEL = 32                               # args.channel
D_HID = 64                                 # args.d_hid
MILF_DEPTH = 1                             # args.milf
MCLF_DEPTH = 1                             # args.mclf
OUT_JOINTS = J                             # args.out_joints
SELF_SUPERVISED = False                    # opt.self_supervised (Mlp head gated off)
LN_EPS = 1e-5
BN_EPS = 1e-5

N_TOK = B * F                              # tokens = rows
JC = J * C_IN                              # per-view input features
C3 = 3 * CHANNEL                           # 3 fused streams
HEAD_PAD = 128                             # lane-dense padded head width
ROW_TILE_MAX = 256                         # token-axis tile for the parallel grid


def _gelu(y):
    # tanh-approx GELU (PyTorch nn.GELU default is exact erf; diff ~1e-3)
    c = 0.7978845608028654  # sqrt(2/pi)
    return 0.5 * y * (1.0 + jnp.tanh(c * (y + 0.044715 * y * y * y)))


# ----------------------------- fused Pallas kernel -----------------------------
def _fused_forward_kernel(*refs, milf_depth, mclf_depth):
    """Whole network in one kernel.  All weight refs are full-array VMEM blocks.

    Ref order: x, aseg, afull, smfe_w, smfe_b, mvf_w, mvf_b, norm_g, norm_b,
               [milf: w1, b1, w2, b2, g, be] * milf_depth,
               [mclf: w1, b1, w2, b2, g, be] * mclf_depth,
               head_w, head_b, out
    """
    it = iter(refs)
    x_ref = next(it)
    aseg_ref, afull_ref = next(it), next(it)
    smfe_w, smfe_b = next(it), next(it)
    mvf_w, mvf_b = next(it), next(it)
    n0_g, n0_b = next(it), next(it)
    milf = [tuple(next(it) for _ in range(6)) for _ in range(milf_depth)]
    mclf = [tuple(next(it) for _ in range(6)) for _ in range(mclf_depth)]
    head_w, head_b = next(it), next(it)
    o_ref = next(it)

    def mm(a, w_ref):
        # bf16 x bf16 MXU matmul with f32 accumulation.
        return jnp.dot(a.astype(jnp.bfloat16), w_ref[...],
                       preferred_element_type=jnp.float32)

    def ln_mxu(z, avg_ref, g_ref, b_ref):
        # Single-pass (segmented or full) LayerNorm: the block-constant
        # averaging matrix turns the cross-lane reductions into two tiny MXU
        # matmuls (kept f32 for accuracy).
        A = avg_ref[...]
        mu = jnp.dot(z, A, preferred_element_type=jnp.float32)
        ex2 = jnp.dot(z * z, A, preferred_element_type=jnp.float32)
        var = jnp.maximum(ex2 - mu * mu, 0.0)
        return (z - mu) * jax.lax.rsqrt(var + LN_EPS) * g_ref[...] + b_ref[...]

    x = x_ref[...]                                                   # (TM, M*JC) f32

    # SMFE: one block-diagonal GEMM computes all 4 views x 3 streams at once.
    feat = _gelu(mm(x, smfe_w) + smfe_b[...])                        # (TM, M*3C)

    # MVF + sum-over-views residual: the view-sum is folded into mvf_w
    # (identity blocks added at parameter-prep time), so this single GEMM
    # yields mvf(cat_views) + sum_views(feat) for all 3 streams.
    res = mm(feat, mvf_w) + mvf_b[...]                               # (TM, 3C)
    xc = ln_mxu(res, aseg_ref, n0_g, n0_b)

    # MILF: per-stream residual MLP blocks, batched as block-diagonal GEMMs.
    for (w1, b1, w2, b2, g, be) in milf:
        h = _gelu(mm(xc, w1) + b1[...])
        z = xc + mm(h, w2) + b2[...]
        xc = ln_mxu(z, aseg_ref, g, be)

    # MCLF: cross-stream residual MLP over the full 3*CHANNEL slab.
    for (w1, b1, w2, b2, g, be) in mclf:
        h = _gelu(mm(xc, w1) + b1[...])
        z = xc + mm(h, w2) + b2[...]
        xc = ln_mxu(z, afull_ref, g, be)

    # regression head: eval-BN folded into the kernel-size-1 Conv1d weights,
    # zero-padded to 128 output lanes so the final store is unmasked.
    o_ref[...] = mm(xc, head_w) + head_b[...]                        # (TM, 128)


def fused_forward(flat_params, x_flat):
    n, d_in = x_flat.shape
    tile = n if n <= ROW_TILE_MAX else ROW_TILE_MAX
    assert n % tile == 0, (n, tile)
    grid = (n // tile,)

    ins = [x_flat] + list(flat_params)
    in_specs = [pl.BlockSpec((tile, d_in), lambda i: (i, 0))]
    for a in flat_params:
        assert a.ndim == 2
        # Full-array weight blocks with a constant index_map: stay VMEM
        # resident across row-tile grid steps.
        in_specs.append(pl.BlockSpec(a.shape, lambda i: (0, 0)))

    return pl.pallas_call(
        functools.partial(_fused_forward_kernel,
                          milf_depth=MILF_DEPTH, mclf_depth=MCLF_DEPTH),
        grid=grid,
        in_specs=in_specs,
        out_specs=pl.BlockSpec((tile, HEAD_PAD), lambda i: (i, 0)),
        out_shape=jax.ShapeDtypeStruct((n, HEAD_PAD), jnp.float32),
        compiler_params=pltpu.CompilerParams(dimension_semantics=("parallel",)),
    )(*ins)


# --------------- small generic linear kernel (only for the gated Mlp head) ---------------
# TODO(synk): if SELF_SUPERVISED is ever enabled, fold this head into the fused
# kernel (or transpose so the wide B*3J axis sits on lanes) to avoid two extra
# launches with an 8-lane-wide input.
def _linear_kernel(x_ref, w_ref, b_ref, o_ref, *, act):
    y = jnp.dot(x_ref[...], w_ref[...], preferred_element_type=jnp.float32) + b_ref[...]
    if act == "gelu":
        y = _gelu(y)
    o_ref[...] = y


def pallas_linear(x, w, b, act="none"):
    n, din = x.shape
    dout = w.shape[1]
    return pl.pallas_call(
        functools.partial(_linear_kernel, act=act),
        grid=(1,),
        in_specs=[
            pl.BlockSpec((n, din), lambda i: (0, 0)),
            pl.BlockSpec((din, dout), lambda i: (0, 0)),
            pl.BlockSpec((1, dout), lambda i: (0, 0)),
        ],
        out_specs=pl.BlockSpec((n, dout), lambda i: (0, 0)),
        out_shape=jax.ShapeDtypeStruct((n, dout), jnp.float32),
    )(x, w, b.reshape(1, dout))


# ----------------------------- parameter init (original structure) -----------------------------
def _init_linear(key, din, dout, scale=0.02):
    w = scale * jax.random.normal(key, (din, dout), jnp.float32)
    b = jnp.zeros((dout,), jnp.float32)
    return w, b


def init_params(seed=0):
    key = jax.random.PRNGKey(seed)
    keys = iter(jax.random.split(key, 256))
    p = {}

    # SMFE x4: each view produces three (B,F,CHANNEL) features from (B,F,J*C)
    p["smfe"] = [[_init_linear(next(keys), JC, CHANNEL) for _ in range(3)]
                 for _ in range(M)]
    # MVF x3: fuse 4 concatenated view features -> CHANNEL
    p["mvf"] = [_init_linear(next(keys), 4 * CHANNEL, CHANNEL) for _ in range(3)]
    # LayerNorms x3
    p["norm"] = [(jnp.ones((CHANNEL,), jnp.float32), jnp.zeros((CHANNEL,), jnp.float32))
                 for _ in range(3)]
    # MILF: per-stream residual MLP blocks (3 streams x depth)
    p["milf"] = [
        [
            (
                _init_linear(next(keys), CHANNEL, CHANNEL),
                _init_linear(next(keys), CHANNEL, CHANNEL),
                (jnp.ones((CHANNEL,), jnp.float32), jnp.zeros((CHANNEL,), jnp.float32)),
            )
            for _ in range(MILF_DEPTH)
        ]
        for _ in range(3)
    ]
    # MCLF: fused-stream residual MLP blocks over 3*CHANNEL with hidden D_HID
    p["mclf"] = [
        (
            _init_linear(next(keys), C3, D_HID),
            _init_linear(next(keys), D_HID, C3),
            (jnp.ones((C3,), jnp.float32), jnp.zeros((C3,), jnp.float32)),
        )
        for _ in range(MCLF_DEPTH)
    ]
    # regression head: BatchNorm1d(3*CHANNEL) (eval mode) + Conv1d(3*CHANNEL -> 3*J, k=1).
    # Folding relies on kernel_size==1 and eval-mode (running-stats) BatchNorm.
    w_reg, b_reg = _init_linear(next(keys), C3, 3 * OUT_JOINTS)
    bn_gamma = jnp.ones((C3,), jnp.float32)
    bn_beta = jnp.zeros((C3,), jnp.float32)
    bn_mean = jnp.zeros((C3,), jnp.float32)
    bn_var = jnp.ones((C3,), jnp.float32)
    scale = bn_gamma / jnp.sqrt(bn_var + BN_EPS)
    shift = bn_beta - bn_mean * scale
    p["reg_eff"] = (w_reg * scale[:, None], b_reg + shift @ w_reg)
    # Mlp head over frames (used only when SELF_SUPERVISED)
    p["mlp"] = (_init_linear(next(keys), F, 64), _init_linear(next(keys), 64, 1))
    return p


# -------------------- fold params into the fused lane-dense layout --------------------
def fold_params(p):
    bf16 = jnp.bfloat16

    # Constant averaging matrices for MXU-based LayerNorm:
    #   A_seg[i,j] = 1/CHANNEL if columns i and j are in the same stream block
    #   A_full[i,j] = 1/(3*CHANNEL)
    blk = jnp.arange(C3) // CHANNEL
    aseg = jnp.where(blk[:, None] == blk[None, :], 1.0 / CHANNEL, 0.0).astype(jnp.float32)
    afull = jnp.full((C3, C3), 1.0 / C3, jnp.float32)

    # SMFE: block-diagonal (M*JC, M*3C); view v's 3 stream weights concatenated on lanes.
    # TODO(synk): if CHANNEL/D_HID scale to >=128, replace the zero-padded
    # block-diagonal folds with per-view / per-stream dots to avoid wasted MXU
    # cycles and VMEM (75% / 67% zeros here is negligible at 32-wide streams).
    smfe_w = jnp.zeros((M * JC, M * C3), jnp.float32)
    smfe_b = jnp.zeros((M * C3,), jnp.float32)
    for vi in range(M):
        for k in range(3):
            w, b = p["smfe"][vi][k]
            r0 = vi * JC
            c0 = vi * C3 + k * CHANNEL
            smfe_w = smfe_w.at[r0:r0 + JC, c0:c0 + CHANNEL].set(w)
            smfe_b = smfe_b.at[c0:c0 + CHANNEL].set(b)

    # MVF: effective (M*3C, 3C) weight whose rows follow feat's view-major /
    # stream-interleaved layout, PLUS identity blocks so the same GEMM also
    # produces the sum-over-views residual.
    mvf_w = jnp.zeros((M * C3, C3), jnp.float32)
    mvf_b = jnp.zeros((C3,), jnp.float32)
    for k in range(3):
        w, b = p["mvf"][k]                        # (4*CHANNEL, CHANNEL)
        mvf_b = mvf_b.at[k * CHANNEL:(k + 1) * CHANNEL].set(b)
        for vi in range(M):
            r0 = vi * C3 + k * CHANNEL
            mvf_w = mvf_w.at[r0:r0 + CHANNEL, k * CHANNEL:(k + 1) * CHANNEL].set(
                w[vi * CHANNEL:(vi + 1) * CHANNEL, :])
    mvf_w = mvf_w + jnp.tile(jnp.eye(C3, dtype=jnp.float32), (M, 1))   # + view-sum residual

    norm_g = jnp.concatenate([p["norm"][k][0] for k in range(3)]).reshape(1, -1)
    norm_b = jnp.concatenate([p["norm"][k][1] for k in range(3)]).reshape(1, -1)

    # MILF: per-depth block-diagonal over the 3 streams.
    milf_flat = []
    for d in range(MILF_DEPTH):
        w1 = jnp.zeros((C3, C3), jnp.float32)
        b1 = jnp.zeros((C3,), jnp.float32)
        w2 = jnp.zeros((C3, C3), jnp.float32)
        b2 = jnp.zeros((C3,), jnp.float32)
        gs, bs = [], []
        for k in range(3):
            (w1k, b1k), (w2k, b2k), (gk, bek) = p["milf"][k][d]
            s = slice(k * CHANNEL, (k + 1) * CHANNEL)
            w1 = w1.at[s, s].set(w1k)
            b1 = b1.at[s].set(b1k)
            w2 = w2.at[s, s].set(w2k)
            b2 = b2.at[s].set(b2k)
            gs.append(gk)
            bs.append(bek)
        milf_flat += [w1.astype(bf16), b1.reshape(1, -1),
                      w2.astype(bf16), b2.reshape(1, -1),
                      jnp.concatenate(gs).reshape(1, -1),
                      jnp.concatenate(bs).reshape(1, -1)]

    # MCLF blocks (already full-width).
    mclf_flat = []
    for d in range(MCLF_DEPTH):
        (w1, b1), (w2, b2), (g, be) = p["mclf"][d]
        mclf_flat += [w1.astype(bf16), b1.reshape(1, -1),
                      w2.astype(bf16), b2.reshape(1, -1),
                      g.reshape(1, -1), be.reshape(1, -1)]

    # Regression head padded to a lane-dense 128-wide output slab.
    w_eff, b_eff = p["reg_eff"]                   # (C3, 3*J), (3*J,)
    head_w = jnp.zeros((C3, HEAD_PAD), jnp.float32).at[:, :3 * OUT_JOINTS].set(w_eff)
    head_b = jnp.zeros((1, HEAD_PAD), jnp.float32).at[0, :3 * OUT_JOINTS].set(b_eff)

    flat = ([aseg, afull,
             smfe_w.astype(bf16), smfe_b.reshape(1, -1),
             mvf_w.astype(bf16), mvf_b.reshape(1, -1),
             norm_g, norm_b]
            + milf_flat + mclf_flat
            + [head_w.astype(bf16), head_b])
    return flat


# ----------------------------- model forward -----------------------------
def model_forward(flat_params, mlp_params, x):
    # x: (B, F, M, J, C)
    b, f, m, j, c = x.shape
    n = b * f
    # tokens-major, view-major feature columns: x_flat[b*F+f, v*JC + jc] = x[b,f,v,j,c]
    x_flat = x.reshape(n, m * j * c)

    y = fused_forward(flat_params, x_flat)[:, :3 * OUT_JOINTS]   # (N, 3*J)
    y = y.reshape(b, f, 3 * OUT_JOINTS)                          # == (B, 3J, F) in NCW terms

    if SELF_SUPERVISED:
        # Mlp over the frame axis of the (B, 3J, F) tensor -> (B, 3J, 1)
        yt = jnp.transpose(y, (0, 2, 1)).reshape(b * 3 * OUT_JOINTS, f)
        (w1, b1), (w2, b2) = mlp_params
        h = pallas_linear(yt, w1, b1, act="gelu")
        yt = pallas_linear(h, w2, b2)                   # (B*3J, 1)
        y = jnp.transpose(yt.reshape(b, 3 * OUT_JOINTS, 1), (0, 2, 1))  # (B, 1, 3J)
        return y.reshape(b, 1, OUT_JOINTS, 3)

    # rearrange 'b (j c) f -> b f j c' (y is frame-major (B, F, 3J))
    return y.reshape(b, f, OUT_JOINTS, 3)


# ----------------------------- pure-JAX reference (unfused f32 params) -----------------------------
def reference_forward(p, x):
    b, f, m, j, c = x.shape
    n = b * f

    def lin(v, wb, act=False):
        w, bb = wb
        y = v @ w + bb
        return _gelu(y) if act else y

    def ln(v, gb):
        g, be = gb
        mu = v.mean(-1, keepdims=True)
        var = ((v - mu) ** 2).mean(-1, keepdims=True)
        return (v - mu) / jnp.sqrt(var + LN_EPS) * g + be

    feats = [[], [], []]
    for vi in range(M):
        v = x[:, :, vi].reshape(n, j * c)
        for k in range(3):
            feats[k].append(lin(v, p["smfe"][vi][k], act=True))
    streams = []
    for k in range(3):
        cat = jnp.concatenate(feats[k], axis=-1)
        res = lin(cat, p["mvf"][k]) + feats[k][0] + feats[k][1] + feats[k][2] + feats[k][3]
        streams.append(ln(res, p["norm"][k]))
    outs = []
    for k in range(3):
        xk = streams[k]
        for d in range(MILF_DEPTH):
            w1b, w2b, nb = p["milf"][k][d]
            xk = ln(xk + lin(lin(xk, w1b, act=True), w2b), nb)
        outs.append(xk)
    xc = jnp.concatenate(outs, axis=-1)
    for d in range(MCLF_DEPTH):
        w1b, w2b, nb = p["mclf"][d]
        xc = ln(xc + lin(lin(xc, w1b, act=True), w2b), nb)
    w_eff, b_eff = p["reg_eff"]
    y = xc @ w_eff + b_eff
    return y.reshape(b, f, OUT_JOINTS, 3)


# ----------------------------- main -----------------------------
if __name__ == "__main__":
    key = jax.random.PRNGKey(0)
    x = jax.random.normal(key, (B, F, M, J, C_IN), jnp.float32)

    params = init_params(seed=0)
    flat = fold_params(params)

    fwd = jax.jit(functools.partial(model_forward, flat, params["mlp"]))
    out = jax.block_until_ready(fwd(x))

    assert out.shape == (B, F, OUT_JOINTS, 3), out.shape
    assert bool(jnp.all(jnp.isfinite(out)))

    # Reference is pure f32; the kernel uses bf16 weights / bf16 MXU inputs
    # with f32 accumulation, so allow a few e-3 of quantization error.
    ref = reference_forward(params, x)
    assert bool(jnp.allclose(out, ref, rtol=3e-2, atol=3e-2)), \
        float(jnp.max(jnp.abs(out - ref)))

    print("KERNEL_OK")
</pallas_src>

<mosaic_0001>
module attributes {stable_mosaic.version = 11 : i64} {
  func.func @_fused_forward_kernel(%arg0: i32, %arg1: memref<16x64xf32, #tpu.memory_space<vmem>>, %arg2: memref<96x96xf32, #tpu.memory_space<vmem>>, %arg3: memref<96x96xf32, #tpu.memory_space<vmem>>, %arg4: memref<64x384xbf16, #tpu.memory_space<vmem>>, %arg5: memref<1x384xf32, #tpu.memory_space<vmem>>, %arg6: memref<384x96xbf16, #tpu.memory_space<vmem>>, %arg7: memref<1x96xf32, #tpu.memory_space<vmem>>, %arg8: memref<1x96xf32, #tpu.memory_space<vmem>>, %arg9: memref<1x96xf32, #tpu.memory_space<vmem>>, %arg10: memref<96x96xbf16, #tpu.memory_space<vmem>>, %arg11: memref<1x96xf32, #tpu.memory_space<vmem>>, %arg12: memref<96x96xbf16, #tpu.memory_space<vmem>>, %arg13: memref<1x96xf32, #tpu.memory_space<vmem>>, %arg14: memref<1x96xf32, #tpu.memory_space<vmem>>, %arg15: memref<1x96xf32, #tpu.memory_space<vmem>>, %arg16: memref<96x64xbf16, #tpu.memory_space<vmem>>, %arg17: memref<1x64xf32, #tpu.memory_space<vmem>>, %arg18: memref<64x96xbf16, #tpu.memory_space<vmem>>, %arg19: memref<1x96xf32, #tpu.memory_space<vmem>>, %arg20: memref<1x96xf32, #tpu.memory_space<vmem>>, %arg21: memref<1x96xf32, #tpu.memory_space<vmem>>, %arg22: memref<96x128xbf16, #tpu.memory_space<vmem>>, %arg23: memref<1x128xf32, #tpu.memory_space<vmem>>, %arg24: memref<16x128xf32, #tpu.memory_space<vmem>>) attributes {dimension_semantics = [#tpu.dimension_semantics<parallel>], iteration_bounds = array<i64: 1>, scalar_prefetch = 0 : i64, scratch_operands = 0 : i64, tpu.core_type = #tpu.core_type<tc>, window_params = [{transform_indices = @transform_0, window_bounds = array<i64: 16, 64>}, {pipeline_mode = #tpu.pipeline_mode<synchronous>, transform_indices = @transform_1, window_bounds = array<i64: 96, 96>}, {pipeline_mode = #tpu.pipeline_mode<synchronous>, transform_indices = @transform_2, window_bounds = array<i64: 96, 96>}, {pipeline_mode = #tpu.pipeline_mode<synchronous>, transform_indices = @transform_3, window_bounds = array<i64: 64, 384>}, {pipeline_mode = #tpu.pipeline_mode<synchronous>, transform_indices = @transform_4, window_bounds = array<i64: 1, 384>}, {pipeline_mode = #tpu.pipeline_mode<synchronous>, transform_indices = @transform_5, window_bounds = array<i64: 384, 96>}, {pipeline_mode = #tpu.pipeline_mode<synchronous>, transform_indices = @transform_6, window_bounds = array<i64: 1, 96>}, {pipeline_mode = #tpu.pipeline_mode<synchronous>, transform_indices = @transform_7, window_bounds = array<i64: 1, 96>}, {pipeline_mode = #tpu.pipeline_mode<synchronous>, transform_indices = @transform_8, window_bounds = array<i64: 1, 96>}, {pipeline_mode = #tpu.pipeline_mode<synchronous>, transform_indices = @transform_9, window_bounds = array<i64: 96, 96>}, {pipeline_mode = #tpu.pipeline_mode<synchronous>, transform_indices = @transform_10, window_bounds = array<i64: 1, 96>}, {pipeline_mode = #tpu.pipeline_mode<synchronous>, transform_indices = @transform_11, window_bounds = array<i64: 96, 96>}, {pipeline_mode = #tpu.pipeline_mode<synchronous>, transform_indices = @transform_12, window_bounds = array<i64: 1, 96>}, {pipeline_mode = #tpu.pipeline_mode<synchronous>, transform_indices = @transform_13, window_bounds = array<i64: 1, 96>}, {pipeline_mode = #tpu.pipeline_mode<synchronous>, transform_indices = @transform_14, window_bounds = array<i64: 1, 96>}, {pipeline_mode = #tpu.pipeline_mode<synchronous>, transform_indices = @transform_15, window_bounds = array<i64: 96, 64>}, {pipeline_mode = #tpu.pipeline_mode<synchronous>, transform_indices = @transform_16, window_bounds = array<i64: 1, 64>}, {pipeline_mode = #tpu.pipeline_mode<synchronous>, transform_indices = @transform_17, window_bounds = array<i64: 64, 96>}, {pipeline_mode = #tpu.pipeline_mode<synchronous>, transform_indices = @transform_18, window_bounds = array<i64: 1, 96>}, {pipeline_mode = #tpu.pipeline_mode<synchronous>, transform_indices = @transform_19, window_bounds = array<i64: 1, 96>}, {pipeline_mode = #tpu.pipeline_mode<synchronous>, transform_indices = @transform_20, window_bounds = array<i64: 1, 96>}, {pipeline_mode = #tpu.pipeline_mode<synchronous>, transform_indices = @transform_21, window_bounds = array<i64: 96, 128>}, {pipeline_mode = #tpu.pipeline_mode<synchronous>, transform_indices = @transform_22, window_bounds = array<i64: 1, 128>}, {transform_indices = @transform_23, window_bounds = array<i64: 16, 128>}]} {
    %c0 = arith.constant 0 : index
    %c0_0 = arith.constant 0 : index
    %0 = vector.load %arg1[%c0, %c0_0] : memref<16x64xf32, #tpu.memory_space<vmem>>, vector<16x64xf32>
    %1 = arith.truncf %0 : vector<16x64xf32> to vector<16x64xbf16>
    %c0_1 = arith.constant 0 : index
    %c0_2 = arith.constant 0 : index
    %2 = vector.load %arg4[%c0_1, %c0_2] : memref<64x384xbf16, #tpu.memory_space<vmem>>, vector<64x384xbf16>
    %cst = arith.constant dense<0.000000e+00> : vector<16x384xf32>
    %3 = tpu.matmul %1, %2, %cst {dimension_numbers = #tpu.dot_dimension_numbers<[1], [0], [0], [1], [0, 0, 1, 1], [], []>} : vector<16x64xbf16>, vector<64x384xbf16>, vector<16x384xf32> -> vector<16x384xf32>
    %c0_3 = arith.constant 0 : index
    %c0_4 = arith.constant 0 : index
    %4 = vector.load %arg5[%c0_3, %c0_4] : memref<1x384xf32, #tpu.memory_space<vmem>>, vector<1x384xf32>
    %5 = vector.broadcast %4 : vector<1x384xf32> to vector<16x384xf32>
    %6 = arith.addf %3, %5 : vector<16x384xf32>
    %cst_5 = arith.constant 5.000000e-01 : f32
    %7 = vector.broadcast %cst_5 : f32 to vector<16x384xf32>
    %8 = arith.mulf %7, %6 : vector<16x384xf32>
    %cst_6 = arith.constant 4.471500e-02 : f32
    %9 = vector.broadcast %cst_6 : f32 to vector<16x384xf32>
    %10 = arith.mulf %9, %6 : vector<16x384xf32>
    %11 = arith.mulf %10, %6 : vector<16x384xf32>
    %12 = arith.mulf %11, %6 : vector<16x384xf32>
    %13 = arith.addf %6, %12 : vector<16x384xf32>
    %cst_7 = arith.constant 0.797884583 : f32
    %14 = vector.broadcast %cst_7 : f32 to vector<16x384xf32>
    %15 = arith.mulf %14, %13 : vector<16x384xf32>
    %16 = math.tanh %15 : vector<16x384xf32>
    %cst_8 = arith.constant 1.000000e+00 : f32
    %17 = vector.broadcast %cst_8 : f32 to vector<16x384xf32>
    %18 = arith.addf %17, %16 : vector<16x384xf32>
    %19 = arith.mulf %8, %18 : vector<16x384xf32>
    %20 = arith.truncf %19 : vector<16x384xf32> to vector<16x384xbf16>
    %c0_9 = arith.constant 0 : index
    %c0_10 = arith.constant 0 : index
    %21 = vector.load %arg6[%c0_9, %c0_10] : memref<384x96xbf16, #tpu.memory_space<vmem>>, vector<384x96xbf16>
    %cst_11 = arith.constant dense<0.000000e+00> : vector<16x96xf32>
    %22 = tpu.matmul %20, %21, %cst_11 {dimension_numbers = #tpu.dot_dimension_numbers<[1], [0], [0], [1], [0, 0, 1, 1], [], []>} : vector<16x384xbf16>, vector<384x96xbf16>, vector<16x96xf32> -> vector<16x96xf32>
    %c0_12 = arith.constant 0 : index
    %c0_13 = arith.constant 0 : index
    %23 = vector.load %arg7[%c0_12, %c0_13] : memref<1x96xf32, #tpu.memory_space<vmem>>, vector<1x96xf32>
    %24 = vector.broadcast %23 : vector<1x96xf32> to vector<16x96xf32>
    %25 = arith.addf %22, %24 : vector<16x96xf32>
    %c0_14 = arith.constant 0 : index
    %c0_15 = arith.constant 0 : index
    %26 = vector.load %arg2[%c0_14, %c0_15] : memref<96x96xf32, #tpu.memory_space<vmem>>, vector<96x96xf32>
    %cst_16 = arith.constant dense<0.000000e+00> : vector<16x96xf32>
    %27 = tpu.matmul %25, %26, %cst_16 {dimension_numbers = #tpu.dot_dimension_numbers<[1], [0], [0], [1], [0, 0, 1, 1], [], []>} : vector<16x96xf32>, vector<96x96xf32>, vector<16x96xf32> -> vector<16x96xf32>
    %28 = arith.mulf %25, %25 : vector<16x96xf32>
    %cst_17 = arith.constant dense<0.000000e+00> : vector<16x96xf32>
    %29 = tpu.matmul %28, %26, %cst_17 {dimension_numbers = #tpu.dot_dimension_numbers<[1], [0], [0], [1], [0, 0, 1, 1], [], []>} : vector<16x96xf32>, vector<96x96xf32>, vector<16x96xf32> -> vector<16x96xf32>
    %30 = arith.mulf %27, %27 : vector<16x96xf32>
    %31 = arith.subf %29, %30 : vector<16x96xf32>
    %cst_18 = arith.constant 0.000000e+00 : f32
    %32 = vector.broadcast %cst_18 : f32 to vector<16x96xf32>
    %33 = arith.maximumf %31, %32 : vector<16x96xf32>
    %34 = arith.subf %25, %27 : vector<16x96xf32>
    %cst_19 = arith.constant 9.99999974E-6 : f32
    %35 = vector.broadcast %cst_19 : f32 to vector<16x96xf32>
    %36 = arith.addf %33, %35 : vector<16x96xf32>
    %37 = math.rsqrt %36 : vector<16x96xf32>
    %38 = arith.mulf %34, %37 : vector<16x96xf32>
    %c0_20 = arith.constant 0 : index
    %c0_21 = arith.constant 0 : index
    %39 = vector.load %arg8[%c0_20, %c0_21] : memref<1x96xf32, #tpu.memory_space<vmem>>, vector<1x96xf32>
    %40 = vector.broadcast %39 : vector<1x96xf32> to vector<16x96xf32>
    %41 = arith.mulf %38, %40 : vector<16x96xf32>
    %c0_22 = arith.constant 0 : index
    %c0_23 = arith.constant 0 : index
    %42 = vector.load %arg9[%c0_22, %c0_23] : memref<1x96xf32, #tpu.memory_space<vmem>>, vector<1x96xf32>
    %43 = vector.broadcast %42 : vector<1x96xf32> to vector<16x96xf32>
    %44 = arith.addf %41, %43 : vector<16x96xf32>
    %45 = arith.truncf %44 : vector<16x96xf32> to vector<16x96xbf16>
    %c0_24 = arith.constant 0 : index
    %c0_25 = arith.constant 0 : index
    %46 = vector.load %arg10[%c0_24, %c0_25] : memref<96x96xbf16, #tpu.memory_space<vmem>>, vector<96x96xbf16>
    %cst_26 = arith.constant dense<0.000000e+00> : vector<16x96xf32>
    %47 = tpu.matmul %45, %46, %cst_26 {dimension_numbers = #tpu.dot_dimension_numbers<[1], [0], [0], [1], [0, 0, 1, 1], [], []>} : vector<16x96xbf16>, vector<96x96xbf16>, vector<16x96xf32> -> vector<16x96xf32>
    %c0_27 = arith.constant 0 : index
    %c0_28 = arith.constant 0 : index
    %48 = vector.load %arg11[%c0_27, %c0_28] : memref<1x96xf32, #tpu.memory_space<vmem>>, vector<1x96xf32>
    %49 = vector.broadcast %48 : vector<1x96xf32> to vector<16x96xf32>
    %50 = arith.addf %47, %49 : vector<16x96xf32>
    %cst_29 = arith.constant 5.000000e-01 : f32
    %51 = vector.broadcast %cst_29 : f32 to vector<16x96xf32>
    %52 = arith.mulf %51, %50 : vector<16x96xf32>
    %cst_30 = arith.constant 4.471500e-02 : f32
    %53 = vector.broadcast %cst_30 : f32 to vector<16x96xf32>
    %54 = arith.mulf %53, %50 : vector<16x96xf32>
    %55 = arith.mulf %54, %50 : vector<16x96xf32>
    %56 = arith.mulf %55, %50 : vector<16x96xf32>
    %57 = arith.addf %50, %56 : vector<16x96xf32>
    %cst_31 = arith.constant 0.797884583 : f32
    %58 = vector.broadcast %cst_31 : f32 to vector<16x96xf32>
    %59 = arith.mulf %58, %57 : vector<16x96xf32>
    %60 = math.tanh %59 : vector<16x96xf32>
    %cst_32 = arith.constant 1.000000e+00 : f32
    %61 = vector.broadcast %cst_32 : f32 to vector<16x96xf32>
    %62 = arith.addf %61, %60 : vector<16x96xf32>
    %63 = arith.mulf %52, %62 : vector<16x96xf32>
    %64 = arith.truncf %63 : vector<16x96xf32> to vector<16x96xbf16>
    %c0_33 = arith.constant 0 : index
    %c0_34 = arith.constant 0 : index
    %65 = vector.load %arg12[%c0_33, %c0_34] : memref<96x96xbf16, #tpu.memory_space<vmem>>, vector<96x96xbf16>
    %cst_35 = arith.constant dense<0.000000e+00> : vector<16x96xf32>
    %66 = tpu.matmul %64, %65, %cst_35 {dimension_numbers = #tpu.dot_dimension_numbers<[1], [0], [0], [1], [0, 0, 1, 1], [], []>} : vector<16x96xbf16>, vector<96x96xbf16>, vector<16x96xf32> -> vector<16x96xf32>
    %67 = arith.addf %44, %66 : vector<16x96xf32>
    %c0_36 = arith.constant 0 : index
    %c0_37 = arith.constant 0 : index
    %68 = vector.load %arg13[%c0_36, %c0_37] : memref<1x96xf32, #tpu.memory_space<vmem>>, vector<1x96xf32>
    %69 = vector.broadcast %68 : vector<1x96xf32> to vector<16x96xf32>
    %70 = arith.addf %67, %69 : vector<16x96xf32>
    %c0_38 = arith.constant 0 : index
    %c0_39 = arith.constant 0 : index
    %71 = vector.load %arg2[%c0_38, %c0_39] : memref<96x96xf32, #tpu.memory_space<vmem>>, vector<96x96xf32>
    %cst_40 = arith.constant dense<0.000000e+00> : vector<16x96xf32>
    %72 = tpu.matmul %70, %71, %cst_40 {dimension_numbers = #tpu.dot_dimension_numbers<[1], [0], [0], [1], [0, 0, 1, 1], [], []>} : vector<16x96xf32>, vector<96x96xf32>, vector<16x96xf32> -> vector<16x96xf32>
    %73 = arith.mulf %70, %70 : vector<16x96xf32>
    %cst_41 = arith.constant dense<0.000000e+00> : vector<16x96xf32>
    %74 = tpu.matmul %73, %71, %cst_41 {dimension_numbers = #tpu.dot_dimension_numbers<[1], [0], [0], [1], [0, 0, 1, 1], [], []>} : vector<16x96xf32>, vector<96x96xf32>, vector<16x96xf32> -> vector<16x96xf32>
    %75 = arith.mulf %72, %72 : vector<16x96xf32>
    %76 = arith.subf %74, %75 : vector<16x96xf32>
    %cst_42 = arith.constant 0.000000e+00 : f32
    %77 = vector.broadcast %cst_42 : f32 to vector<16x96xf32>
    %78 = arith.maximumf %76, %77 : vector<16x96xf32>
    %79 = arith.subf %70, %72 : vector<16x96xf32>
    %cst_43 = arith.constant 9.99999974E-6 : f32
    %80 = vector.broadcast %cst_43 : f32 to vector<16x96xf32>
    %81 = arith.addf %78, %80 : vector<16x96xf32>
    %82 = math.rsqrt %81 : vector<16x96xf32>
    %83 = arith.mulf %79, %82 : vector<16x96xf32>
    %c0_44 = arith.constant 0 : index
    %c0_45 = arith.constant 0 : index
    %84 = vector.load %arg14[%c0_44, %c0_45] : memref<1x96xf32, #tpu.memory_space<vmem>>, vector<1x96xf32>
    %85 = vector.broadcast %84 : vector<1x96xf32> to vector<16x96xf32>
    %86 = arith.mulf %83, %85 : vector<16x96xf32>
    %c0_46 = arith.constant 0 : index
    %c0_47 = arith.constant 0 : index
    %87 = vector.load %arg15[%c0_46, %c0_47] : memref<1x96xf32, #tpu.memory_space<vmem>>, vector<1x96xf32>
    %88 = vector.broadcast %87 : vector<1x96xf32> to vector<16x96xf32>
    %89 = arith.addf %86, %88 : vector<16x96xf32>
    %90 = arith.truncf %89 : vector<16x96xf32> to vector<16x96xbf16>
    %c0_48 = arith.constant 0 : index
    %c0_49 = arith.constant 0 : index
    %91 = vector.load %arg16[%c0_48, %c0_49] : memref<96x64xbf16, #tpu.memory_space<vmem>>, vector<96x64xbf16>
    %cst_50 = arith.constant dense<0.000000e+00> : vector<16x64xf32>
    %92 = tpu.matmul %90, %91, %cst_50 {dimension_numbers = #tpu.dot_dimension_numbers<[1], [0], [0], [1], [0, 0, 1, 1], [], []>} : vector<16x96xbf16>, vector<96x64xbf16>, vector<16x64xf32> -> vector<16x64xf32>
    %c0_51 = arith.constant 0 : index
    %c0_52 = arith.constant 0 : index
    %93 = vector.load %arg17[%c0_51, %c0_52] : memref<1x64xf32, #tpu.memory_space<vmem>>, vector<1x64xf32>
    %94 = vector.broadcast %93 : vector<1x64xf32> to vector<16x64xf32>
    %95 = arith.addf %92, %94 : vector<16x64xf32>
    %cst_53 = arith.constant 5.000000e-01 : f32
    %96 = vector.broadcast %cst_53 : f32 to vector<16x64xf32>
    %97 = arith.mulf %96, %95 : vector<16x64xf32>
    %cst_54 = arith.constant 4.471500e-02 : f32
    %98 = vector.broadcast %cst_54 : f32 to vector<16x64xf32>
    %99 = arith.mulf %98, %95 : vector<16x64xf32>
    %100 = arith.mulf %99, %95 : vector<16x64xf32>
    %101 = arith.mulf %100, %95 : vector<16x64xf32>
    %102 = arith.addf %95, %101 : vector<16x64xf32>
    %cst_55 = arith.constant 0.797884583 : f32
    %103 = vector.broadcast %cst_55 : f32 to vector<16x64xf32>
    %104 = arith.mulf %103, %102 : vector<16x64xf32>
    %105 = math.tanh %104 : vector<16x64xf32>
    %cst_56 = arith.constant 1.000000e+00 : f32
    %106 = vector.broadcast %cst_56 : f32 to vector<16x64xf32>
    %107 = arith.addf %106, %105 : vector<16x64xf32>
    %108 = arith.mulf %97, %107 : vector<16x64xf32>
    %109 = arith.truncf %108 : vector<16x64xf32> to vector<16x64xbf16>
    %c0_57 = arith.constant 0 : index
    %c0_58 = arith.constant 0 : index
    %110 = vector.load %arg18[%c0_57, %c0_58] : memref<64x96xbf16, #tpu.memory_space<vmem>>, vector<64x96xbf16>
    %cst_59 = arith.constant dense<0.000000e+00> : vector<16x96xf32>
    %111 = tpu.matmul %109, %110, %cst_59 {dimension_numbers = #tpu.dot_dimension_numbers<[1], [0], [0], [1], [0, 0, 1, 1], [], []>} : vector<16x64xbf16>, vector<64x96xbf16>, vector<16x96xf32> -> vector<16x96xf32>
    %112 = arith.addf %89, %111 : vector<16x96xf32>
    %c0_60 = arith.constant 0 : index
    %c0_61 = arith.constant 0 : index
    %113 = vector.load %arg19[%c0_60, %c0_61] : memref<1x96xf32, #tpu.memory_space<vmem>>, vector<1x96xf32>
    %114 = vector.broadcast %113 : vector<1x96xf32> to vector<16x96xf32>
    %115 = arith.addf %112, %114 : vector<16x96xf32>
    %c0_62 = arith.constant 0 : index
    %c0_63 = arith.constant 0 : index
    %116 = vector.load %arg3[%c0_62, %c0_63] : memref<96x96xf32, #tpu.memory_space<vmem>>, vector<96x96xf32>
    %cst_64 = arith.constant dense<0.000000e+00> : vector<16x96xf32>
    %117 = tpu.matmul %115, %116, %cst_64 {dimension_numbers = #tpu.dot_dimension_numbers<[1], [0], [0], [1], [0, 0, 1, 1], [], []>} : vector<16x96xf32>, vector<96x96xf32>, vector<16x96xf32> -> vector<16x96xf32>
    %118 = arith.mulf %115, %115 : vector<16x96xf32>
    %cst_65 = arith.constant dense<0.000000e+00> : vector<16x96xf32>
    %119 = tpu.matmul %118, %116, %cst_65 {dimension_numbers = #tpu.dot_dimension_numbers<[1], [0], [0], [1], [0, 0, 1, 1], [], []>} : vector<16x96xf32>, vector<96x96xf32>, vector<16x96xf32> -> vector<16x96xf32>
    %120 = arith.mulf %117, %117 : vector<16x96xf32>
    %121 = arith.subf %119, %120 : vector<16x96xf32>
    %cst_66 = arith.constant 0.000000e+00 : f32
    %122 = vector.broadcast %cst_66 : f32 to vector<16x96xf32>
    %123 = arith.maximumf %121, %122 : vector<16x96xf32>
    %124 = arith.subf %115, %117 : vector<16x96xf32>
    %cst_67 = arith.constant 9.99999974E-6 : f32
    %125 = vector.broadcast %cst_67 : f32 to vector<16x96xf32>
    %126 = arith.addf %123, %125 : vector<16x96xf32>
    %127 = math.rsqrt %126 : vector<16x96xf32>
    %128 = arith.mulf %124, %127 : vector<16x96xf32>
    %c0_68 = arith.constant 0 : index
    %c0_69 = arith.constant 0 : index
    %129 = vector.load %arg20[%c0_68, %c0_69] : memref<1x96xf32, #tpu.memory_space<vmem>>, vector<1x96xf32>
    %130 = vector.broadcast %129 : vector<1x96xf32> to vector<16x96xf32>
    %131 = arith.mulf %128, %130 : vector<16x96xf32>
    %c0_70 = arith.constant 0 : index
    %c0_71 = arith.constant 0 : index
    %132 = vector.load %arg21[%c0_70, %c0_71] : memref<1x96xf32, #tpu.memory_space<vmem>>, vector<1x96xf32>
    %133 = vector.broadcast %132 : vector<1x96xf32> to vector<16x96xf32>
    %134 = arith.addf %131, %133 : vector<16x96xf32>
    %135 = arith.truncf %134 : vector<16x96xf32> to vector<16x96xbf16>
    %c0_72 = arith.constant 0 : index
    %c0_73 = arith.constant 0 : index
    %136 = vector.load %arg22[%c0_72, %c0_73] : memref<96x128xbf16, #tpu.memory_space<vmem>>, vector<96x128xbf16>
    %cst_74 = arith.constant dense<0.000000e+00> : vector<16x128xf32>
    %137 = tpu.matmul %135, %136, %cst_74 {dimension_numbers = #tpu.dot_dimension_numbers<[1], [0], [0], [1], [0, 0, 1, 1], [], []>} : vector<16x96xbf16>, vector<96x128xbf16>, vector<16x128xf32> -> vector<16x128xf32>
    %c0_75 = arith.constant 0 : index
    %c0_76 = arith.constant 0 : index
    %138 = vector.load %arg23[%c0_75, %c0_76] : memref<1x128xf32, #tpu.memory_space<vmem>>, vector<1x128xf32>
    %139 = vector.broadcast %138 : vector<1x128xf32> to vector<16x128xf32>
    %140 = arith.addf %137, %139 : vector<16x128xf32>
    %c0_77 = arith.constant 0 : index
    %c0_78 = arith.constant 0 : index
    %141 = vector.load %arg24[%c0_77, %c0_78] : memref<16x128xf32, #tpu.memory_space<vmem>>, vector<16x128xf32>
    tpu.vector_store %arg24[%c0_77, %c0_78], %140 {strides = array<i32>} : memref<16x128xf32, #tpu.memory_space<vmem>>, vector<16x128xf32>,
    return
  }
  func.func @transform_0(%arg0: i32) -> (i32, i32) {
    %c0_i32 = arith.constant 0 : i32
    %c0_i32_0 = arith.constant 0 : i32
    return %arg0, %c0_i32 : i32, i32
  }
  func.func @transform_1(%arg0: i32) -> (i32, i32) {
    %c0_i32 = arith.constant 0 : i32
    %c0_i32_0 = arith.constant 0 : i32
    %c0_i32_1 = arith.constant 0 : i32
    return %c0_i32, %c0_i32_0 : i32, i32
  }
  func.func @transform_2(%arg0: i32) -> (i32, i32) {
    %c0_i32 = arith.constant 0 : i32
    %c0_i32_0 = arith.constant 0 : i32
    %c0_i32_1 = arith.constant 0 : i32
    return %c0_i32, %c0_i32_0 : i32, i32
  }
  func.func @transform_3(%arg0: i32) -> (i32, i32) {
    %c0_i32 = arith.constant 0 : i32
    %c0_i32_0 = arith.constant 0 : i32
    %c0_i32_1 = arith.constant 0 : i32
    return %c0_i32, %c0_i32_0 : i32, i32
  }
  func.func @transform_4(%arg0: i32) -> (i32, i32) {
    %c0_i32 = arith.constant 0 : i32
    %c0_i32_0 = arith.constant 0 : i32
    %c0_i32_1 = arith.constant 0 : i32
    return %c0_i32, %c0_i32_0 : i32, i32
  }
  func.func @transform_5(%arg0: i32) -> (i32, i32) {
    %c0_i32 = arith.constant 0 : i32
    %c0_i32_0 = arith.constant 0 : i32
    %c0_i32_1 = arith.constant 0 : i32
    return %c0_i32, %c0_i32_0 : i32, i32
  }
  func.func @transform_6(%arg0: i32) -> (i32, i32) {
    %c0_i32 = arith.constant 0 : i32
    %c0_i32_0 = arith.constant 0 : i32
    %c0_i32_1 = arith.constant 0 : i32
    return %c0_i32, %c0_i32_0 : i32, i32
  }
  func.func @transform_7(%arg0: i32) -> (i32, i32) {
    %c0_i32 = arith.constant 0 : i32
    %c0_i32_0 = arith.constant 0 : i32
    %c0_i32_1 = arith.constant 0 : i32
    return %c0_i32, %c0_i32_0 : i32, i32
  }
  func.func @transform_8(%arg0: i32) -> (i32, i32) {
    %c0_i32 = arith.constant 0 : i32
    %c0_i32_0 = arith.constant 0 : i32
    %c0_i32_1 = arith.constant 0 : i32
    return %c0_i32, %c0_i32_0 : i32, i32
  }
  func.func @transform_9(%arg0: i32) -> (i32, i32) {
    %c0_i32 = arith.constant 0 : i32
    %c0_i32_0 = arith.constant 0 : i32
    %c0_i32_1 = arith.constant 0 : i32
    return %c0_i32, %c0_i32_0 : i32, i32
  }
  func.func @transform_10(%arg0: i32) -> (i32, i32) {
    %c0_i32 = arith.constant 0 : i32
    %c0_i32_0 = arith.constant 0 : i32
    %c0_i32_1 = arith.constant 0 : i32
    return %c0_i32, %c0_i32_0 : i32, i32
  }
  func.func @transform_11(%arg0: i32) -> (i32, i32) {
    %c0_i32 = arith.constant 0 : i32
    %c0_i32_0 = arith.constant 0 : i32
    %c0_i32_1 = arith.constant 0 : i32
    return %c0_i32, %c0_i32_0 : i32, i32
  }
  func.func @transform_12(%arg0: i32) -> (i32, i32) {
    %c0_i32 = arith.constant 0 : i32
    %c0_i32_0 = arith.constant 0 : i32
    %c0_i32_1 = arith.constant 0 : i32
    return %c0_i32, %c0_i32_0 : i32, i32
  }
  func.func @transform_13(%arg0: i32) -> (i32, i32) {
    %c0_i32 = arith.constant 0 : i32
    %c0_i32_0 = arith.constant 0 : i32
    %c0_i32_1 = arith.constant 0 : i32
    return %c0_i32, %c0_i32_0 : i32, i32
  }
  func.func @transform_14(%arg0: i32) -> (i32, i32) {
    %c0_i32 = arith.constant 0 : i32
    %c0_i32_0 = arith.constant 0 : i32
    %c0_i32_1 = arith.constant 0 : i32
    return %c0_i32, %c0_i32_0 : i32, i32
  }
  func.func @transform_15(%arg0: i32) -> (i32, i32) {
    %c0_i32 = arith.constant 0 : i32
    %c0_i32_0 = arith.constant 0 : i32
    %c0_i32_1 = arith.constant 0 : i32
    return %c0_i32, %c0_i32_0 : i32, i32
  }
  func.func @transform_16(%arg0: i32) -> (i32, i32) {
    %c0_i32 = arith.constant 0 : i32
    %c0_i32_0 = arith.constant 0 : i32
    %c0_i32_1 = arith.constant 0 : i32
    return %c0_i32, %c0_i32_0 : i32, i32
  }
  func.func @transform_17(%arg0: i32) -> (i32, i32) {
    %c0_i32 = arith.constant 0 : i32
    %c0_i32_0 = arith.constant 0 : i32
    %c0_i32_1 = arith.constant 0 : i32
    return %c0_i32, %c0_i32_0 : i32, i32
  }
  func.func @transform_18(%arg0: i32) -> (i32, i32) {
    %c0_i32 = arith.constant 0 : i32
    %c0_i32_0 = arith.constant 0 : i32
    %c0_i32_1 = arith.constant 0 : i32
    return %c0_i32, %c0_i32_0 : i32, i32
  }
  func.func @transform_19(%arg0: i32) -> (i32, i32) {
    %c0_i32 = arith.constant 0 : i32
    %c0_i32_0 = arith.constant 0 : i32
    %c0_i32_1 = arith.constant 0 : i32
    return %c0_i32, %c0_i32_0 : i32, i32
  }
  func.func @transform_20(%arg0: i32) -> (i32, i32) {
    %c0_i32 = arith.constant 0 : i32
    %c0_i32_0 = arith.constant 0 : i32
    %c0_i32_1 = arith.constant 0 : i32
    return %c0_i32, %c0_i32_0 : i32, i32
  }
  func.func @transform_21(%arg0: i32) -> (i32, i32) {
    %c0_i32 = arith.constant 0 : i32
    %c0_i32_0 = arith.constant 0 : i32
    %c0_i32_1 = arith.constant 0 : i32
    return %c0_i32, %c0_i32_0 : i32, i32
  }
  func.func @transform_22(%arg0: i32) -> (i32, i32) {
    %c0_i32 = arith.constant 0 : i32
    %c0_i32_0 = arith.constant 0 : i32
    %c0_i32_1 = arith.constant 0 : i32
    return %c0_i32, %c0_i32_0 : i32, i32
  }
  func.func @transform_23(%arg0: i32) -> (i32, i32) {
    %c0_i32 = arith.constant 0 : i32
    %c0_i32_0 = arith.constant 0 : i32
    return %arg0, %c0_i32 : i32, i32
  }
}

</mosaic_0001>

<bundles_post_ra>
// kernel: model_forward.1
= control target key start
LH: loop header
LB: loop body
LE: loop exit
PB: predicated region body
PF: predicated region fallthrough
CT: control target
= control target key end

     0   :  { %v2369_v1 = vmov 0   ;;  %v2370_v2 = vmov 0.0   ;;  %vm2371_vm0 = vmmov 0   ;;  %vm175_vm1 = vcmask 523264   ;;  %s3016_s3 = inlined_call_operand.vmem [shape: bf16[64,384], index: 3, kind: input, shape index: {}]   ;;  %s3017_s0 = inlined_call_operand.vmem [shape: f32[16,64], index: 0, kind: input, shape index: {}]   ;;  %s3018_s5 = inlined_call_operand.vmem [shape: bf16[384,96], index: 5, kind: input, shape index: {}]   ;;  %s3019_s1 = inlined_call_operand.vmem [shape: f32[96,96], index: 1, kind: input, shape index: {}]   ;;  %s3020_s4 = inlined_call_operand.vmem [shape: f32[1,384], index: 4, kind: input, shape index: {}]   ;;  %s3021_s6 = inlined_call_operand.vmem [shape: f32[1,96], index: 6, kind: input, shape index: {}, may-alias: {6,8,10,12,14,18,20}]   ;;  %s3022_s9 = inlined_call_operand.vmem [shape: bf16[96,96], index: 9, kind: input, shape index: {}]   ;;  %s3023_s7 = inlined_call_operand.vmem [shape: f32[1,96], index: 7, kind: input, shape index: {}, may-alias: {7,13,19}]   ;;  %s3024_s8 = inlined_call_operand.vmem [shape: f32[1,96], index: 8, kind: input, shape index: {}, may-alias: {6,8,10,12,14,18,20}]   ;;  %s3025_s11 = inlined_call_operand.vmem [shape: bf16[96,96], index: 11, kind: input, shape index: {}]   ;;  %s3026_s10 = inlined_call_operand.vmem [shape: f32[1,96], index: 10, kind: input, shape index: {}, may-alias: {6,8,10,12,14,18,20}]   ;;  %s3027_s12 = inlined_call_operand.vmem [shape: f32[1,96], index: 12, kind: input, shape index: {}, may-alias: {6,8,10,12,14,18,20}]   ;;  %s3028_s15 = inlined_call_operand.vmem [shape: bf16[96,64], index: 15, kind: input, shape index: {}]   ;;  %s3029_s13 = inlined_call_operand.vmem [shape: f32[1,96], index: 13, kind: input, shape index: {}, may-alias: {7,13,19}]   ;;  %s3030_s14 = inlined_call_operand.vmem [shape: f32[1,96], index: 14, kind: input, shape index: {}, may-alias: {6,8,10,12,14,18,20}]   ;;  %s3031_s17 = inlined_call_operand.vmem [shape: bf16[64,96], index: 17, kind: input, shape index: {}]   ;;  %s3032_s2 = inlined_call_operand.vmem [shape: f32[96,96], index: 2, kind: input, shape index: {}]   ;;  %s3033_s16 = inlined_call_operand.vmem [shape: f32[1,64], index: 16, kind: input, shape index: {}]   ;;  %s3034_s18 = inlined_call_operand.vmem [shape: f32[1,96], index: 18, kind: input, shape index: {}, may-alias: {6,8,10,12,14,18,20}]   ;;  %s3035_s21 = inlined_call_operand.vmem [shape: bf16[96,128], index: 21, kind: input, shape index: {}]   ;;  %s3036_s19 = inlined_call_operand.vmem [shape: f32[1,96], index: 19, kind: input, shape index: {}, may-alias: {7,13,19}]   ;;  %s3037_s20 = inlined_call_operand.vmem [shape: f32[1,96], index: 20, kind: input, shape index: {}, may-alias: {6,8,10,12,14,18,20}]   ;;  %s3038_s22 = inlined_call_operand.vmem [shape: f32[1,128], index: 22, kind: input, shape index: {}]   ;;  %s3039_s23 = inlined_call_operand.vmem [shape: f32[16,128], index: 23, kind: output, shape index: {}]  }
   0x1   :  { %3045 = sst [smem:[#allocation2_spill]] %s3016_s3  ;;  %211 = vmatprep.mubr.bf16.mxu0 %v2369_v1  ;;  %2008 = vmatprep.subr.bf16.mxu1 %v2370_v2  ;;  %v96_v42 = vlaneseq  ;;  %vm613_vm2 = vcmask 785408  }
   0x2   :  { %3046 = sst [smem:[#allocation3_spill]] %s3017_s0  ;;  %2024 = vmatprep.mubr.msk.bf16.mxu1 %vm2371_vm0, %v2370_v2 }
   0x3   :  { %3047 = sst [smem:[#allocation4_spill]] %s3018_s5  ;;  %v97_v43 = vshrl.u32 %v96_v42, 7 }
   0x4   :  { %3048 = sst [smem:[#allocation5_spill]] %s3019_s1 }
   0x5   :  { %3049 = sst [smem:[#allocation6_spill]] %s3020_s4  ;;  %v98_v44 = vsub.s32 0, %v97_v43  ;;  %v102_v46 = vsub.s32 1, %v97_v43  ;;  %v106_v63 = vsub.s32 2, %v97_v43 }
   0x6   :  { %3050 = sst [smem:[#allocation7_spill]] %s3021_s6 }
   0x7   :  { %3051 = sst [smem:[#allocation8_spill]] %s3022_s9 }
   0x8   :  { %3052 = sst [smem:[#allocation9_spill]] %s3023_s7 }
   0x9   :  { %s3053_s24 = sld [smem:[#allocation2_spill]] }
   0xa   :  { %s3054_s0 = sld [smem:[#allocation3_spill]] }
   0xb   :  { %s3055_s6 = sld [smem:[#allocation4_spill]] }
   0xc   :  { %s3056_s7 = sld [smem:[#allocation5_spill]] }
   0xd   :  { %s3057_s1 = sld [smem:[#allocation6_spill]] }
   0xe   :  { %s3059_s29 = sld [smem:[#allocation8_spill]] }
   0xf   :  { %v2269_v0 = vld [vmem:[%s3053_s24 + $0x4c] ss:$12 sps:$4 sm:$0xff]   ;;  %v2271_v3 = vld [vmem:[%s3053_s24 + $0x48] ss:$12 sps:$4 sm:$0xff]   ;;  %v2274_v5 = vld [vmem:[%s3053_s24 + $0x30] ss:$12 sps:$4 sm:$0xff]  }
  0x10   :  { %187 = vmatprep.subr.bf16.mxu0 %v2269_v0  ;;  %v2272_v4 = vld [vmem:[%s3053_s24 + $0x34] ss:$12 sps:$4 sm:$0xff]   ;;  %v2275_v6 = vld [vmem:[%s3053_s24 + $0x1c] ss:$12 sps:$4 sm:$0xff]   ;;  %v2277_v7 = vld [vmem:[%s3053_s24 + $0x18] ss:$12 sps:$4 sm:$0xff]  }
  0x11   :  { %188 = vmatpush1.bf16.msra.mxu0 %v2271_v3  ;;  %v2278_v8 = vld [vmem:[%s3053_s24 + $0x4] ss:$12 sps:$4 sm:$0xff]   ;;  %v2280_v9 = vld [vmem:[%s3053_s24] ss:$12 sps:$4 sm:$0xff]   ;;  %v2284_v16 = vld [vmem:[%s3053_s24 + $0x8] ss:$12 sps:$4 sm:$0xff]  }
  0x12   :  { %189 = vmatprep.subr.bf16.mxu0 %v2272_v4  ;;  %v75_v10 = vld [vmem:[%s3054_s0] sm:$0xff]  ;;  %v76_v11 = vld [vmem:[%s3054_s0 + $0x8] sm:$0xff]  ;;  %v2281_v13 = vld [vmem:[%s3053_s24 + $0x50] ss:$12 sps:$4 sm:$0xff]   ;;  %s3060_s27 = sld [smem:[#allocation9_spill]] }
  0x13   :  { %v77_v12 = vpack.c.bf16 %v76_v11, %v75_v10  ;;  %v2282_v14 = vld [vmem:[%s3053_s24 + $0x38] ss:$12 sps:$4 sm:$0xff]   ;;  %v2283_v15 = vld [vmem:[%s3053_s24 + $0x20] ss:$12 sps:$4 sm:$0xff]   ;;  %v2287_v19 = vld [vmem:[%s3055_s6 + $0x70] sm:$0xff]   ;;  %s3058_s24 = sld [smem:[#allocation7_spill]] }
  0x14   :  { %v2285_v17 = vld [vmem:[%s3055_s6 + $0x78] sm:$0xff]   ;;  %v2288_v20 = vld [vmem:[%s3055_s6 + $0x30] sm:$0xff]   ;;  %v2289_v21 = vld [vmem:[%s3055_s6 + $0x68] sm:$0xff]  }
  0x15   :  { %190 = vmatpush1.bf16.msra.mxu0 %v2274_v5  ;;  %v2286_v18 = vld [vmem:[%s3055_s6 + $0x38] sm:$0xff]   ;;  %v2290_v22 = vld [vmem:[%s3055_s6 + $0x28] sm:$0xff]   ;;  %v2291_v23 = vld [vmem:[%s3055_s6 + $0x60] sm:$0xff]  }
  0x16   :  { %191 = vmatprep.subr.bf16.mxu0 %v2275_v6  ;;  %v2292_v24 = vld [vmem:[%s3055_s6 + $0x20] sm:$0xff]   ;;  %v2293_v25 = vld [vmem:[%s3055_s6 + $0xb8] sm:$0xff]   ;;  %v2296_v28 = vld [vmem:[%s3055_s6 + $0xb0] sm:$0xff]  }
  0x17   :  { %2009 = vmatpush3.bf16.msra.mxu1 %v2293_v25  ;;  %v2294_v26 = vld [vmem:[%s3055_s6 + $0x58] sm:$0xff]   ;;  %v2297_v29 = vld [vmem:[%s3055_s6 + $0x50] sm:$0xff]   ;;  %v2299_v31 = vld [vmem:[%s3055_s6 + $0xa8] sm:$0xff]  }
  0x18   :  { %v2295_v27 = vld [vmem:[%s3055_s6 + $0x18] sm:$0xff]   ;;  %2010 = vmatprep.subr.bf16.mxu1 %v2370_v2  ;;  %v2298_v30 = vld [vmem:[%s3055_s6 + $0x10] sm:$0xff]   ;;  %v2300_v32 = vld [vmem:[%s3055_s6 + $0x48] sm:$0xff]  }
  0x19   :  { %192 = vmatpush1.bf16.msra.mxu0 %v2277_v7  ;;  %v2301_v33 = vld [vmem:[%s3055_s6 + $0x8] sm:$0xff]   ;;  %v2302_v34 = vld [vmem:[%s3055_s6 + $0xa0] sm:$0xff]   ;;  %v2305_v37 = vld [vmem:[%s3055_s6 + $0x98] sm:$0xff]  }
  0x1a   :  { %193 = vmatprep.subr.bf16.mxu0 %v2278_v8  ;;  %v2303_v35 = vld [vmem:[%s3055_s6 + $0x40] sm:$0xff]   ;;  %v2306_v38 = vld [vmem:[%s3055_s6 + $0x90] sm:$0xff]   ;;  %v2307_v39 = vld [vmem:[%s3055_s6 + $0x88] sm:$0xff]  }
  0x1b   :  { %2011 = vmatpush3.bf16.msra.mxu1 %v2296_v28  ;;  %v2304_v36 = vld [vmem:[%s3055_s6] sm:$0xff]   ;;  %v2627_v41 = vld [vmem:[%s3056_s7 + $0x58] sm:$0xff] }
  0x1c   :  { %2012 = vmatprep.subr.bf16.mxu1 %v2370_v2  ;;  %v2308_v40 = vld [vmem:[%s3055_s6 + $0x80] sm:$0xff]  }
  0x1d   :  { %194 = vmatpush1.bf16.msra.mxu0 %v2280_v9  ;;  %v94_v45 = vld [vmem:[%s3057_s1] sm:$0x7] }
  0x1e   :  { %1996 = vmatprep.subr.bf16.mxu0 %v2370_v2  ;;  %v99_v47 = vrot.slane %v94_v45, %v98_v44  ;;  %v103_v48 = vrot.slane %v94_v45, %v102_v46  ;;  %v107_v11 = vrot.slane %v94_v45, %v106_v63  ;;  %v2665_v63 = vld [vmem:[%s3056_s7 + $0x38] sm:$0xff] }
  0x1f   :  { %2013 = vmatpush3.bf16.msra.mxu1 %v2299_v31 }
  0x20   :  { %1760 = vmatmul.mubr.msk.bf16.vlgmr.msra.gmra.mxu0 %vm175_vm1, %v77_v12  ;;  %2014 = vmatprep.subr.bf16.mxu1 %v2370_v2 }
  0x21   :  { %1997 = vmatpush3.bf16.msra.mxu0 %v2281_v13  ;;  %2004 = vmatprep.mubr.msk.bf16.mxu0 %vm2371_vm0, %v2370_v2 }
  0x22   :  { %1998 = vmatprep.subr.bf16.mxu0 %v2370_v2 }
  0x23   :  { %2015 = vmatpush3.bf16.msra.mxu1 %v2302_v34 }
  0x24   :  { %2016 = vmatprep.subr.bf16.mxu1 %v2370_v2 }
  0x25   :  { %1999 = vmatpush3.bf16.msra.mxu0 %v2282_v14 }
  0x26   :  { %2000 = vmatprep.subr.bf16.mxu0 %v2370_v2 }
  0x27   :  { %2017 = vmatpush3.bf16.msra.mxu1 %v2305_v37 }
  0x28   :  { %2018 = vmatprep.subr.bf16.mxu1 %v2370_v2 }
  0x29   :  { %2001 = vmatpush3.bf16.msra.mxu0 %v2283_v15 }
  0x2a   :  { %2002 = vmatprep.subr.bf16.mxu0 %v2370_v2 }
  0x2b   :  { %2019 = vmatpush3.bf16.msra.mxu1 %v2306_v38 }
  0x2c   :  { %2020 = vmatprep.subr.bf16.mxu1 %v2370_v2 }
  0x2d   :  { %2003 = vmatpush3.bf16.msra.mxu0 %v2284_v16 }
  0x2e   :  { %1848 = vmatprep.subr.bf16.mxu0 %v2285_v17 }
  0x2f   :  { %2021 = vmatpush3.bf16.msra.mxu1 %v2307_v39 }
  0x30   :  { %2005 = vmatmul.mubr.msk.bf16.vlgmr.msra.gmra.mxu0 %vm175_vm1, %v77_v12  ;;  %2022 = vmatprep.subr.bf16.mxu1 %v2370_v2 }
  0x31   :  { %1849 = vmatpush3.bf16.msra.mxu0 %v2286_v18 }
  0x32   :  { %1850 = vmatprep.subr.bf16.mxu0 %v2287_v19 }
  0x33   :  { %2023 = vmatpush3.bf16.msra.mxu1 %v2308_v40 }
  0x34   :  { %2055 = vmatprep.subr.mxu1 %v2627_v41 }
  0x35   :  { %1851 = vmatpush3.bf16.msra.mxu0 %v2288_v20 }
  0x36   :  { %1852 = vmatprep.subr.bf16.mxu0 %v2289_v21 }
  0x39   :  { %1853 = vmatpush3.bf16.msra.mxu0 %v2290_v22 }
  0x3a   :  { %1854 = vmatprep.subr.bf16.mxu0 %v2291_v23 }
  0x3d   :  { %1855 = vmatpush3.bf16.msra.mxu0 %v2292_v24 }
  0x3e   :  { %1856 = vmatprep.subr.bf16.mxu0 %v2294_v26 }
  0x41   :  { %1857 = vmatpush3.bf16.msra.mxu0 %v2295_v27 }
  0x42   :  { %1858 = vmatprep.subr.bf16.mxu0 %v2297_v29 }
  0x45   :  { %1859 = vmatpush3.bf16.msra.mxu0 %v2298_v30 }
  0x46   :  { %1860 = vmatprep.subr.bf16.mxu0 %v2300_v32 }
  0x49   :  { %1861 = vmatpush3.bf16.msra.mxu0 %v2301_v33 }
  0x4a   :  { %1862 = vmatprep.subr.bf16.mxu0 %v2303_v35 }
  0x4d   :  { %1863 = vmatpush3.bf16.msra.mxu0 %v2304_v36 }
  0x4e   :  { %2028 = vmatprep.subr.mxu0 %v2627_v41 }
  0xe0   :  { %v213_v49 = vpop.f32.mrf.mxu0 }
  0xe1   :  { %v214_v50 = vadd.f32 %v213_v49, %v99_v47 }
  0xe2   :  { %v215_v51 = vpop.f32.mrf.mxu0 }
  0xe3   :  { %v269_v52 = vmul.f32 0.044715, %v214_v50  ;;  %v216_v53 = vadd.f32 %v215_v51, %v103_v48  ;;  %v263_v44 = vmul.f32 0.5, %v214_v50 }
  0xe4   :  { %v217_v54 = vpop.f32.mrf.mxu0 }
  0xe5   :  { %v275_v55 = vmul.f32 %v269_v52, %v214_v50  ;;  %v270_v56 = vmul.f32 0.044715, %v216_v53  ;;  %v218_v57 = vadd.f32 %v217_v54, %v99_v47  ;;  %v264_v40 = vmul.f32 0.5, %v216_v53  ;;  %v2637_v52 = vld [vmem:[%s3056_s7 + $0x50] sm:$0xff] }
  0xe6   :  { %v219_v58 = vpop.f32.mrf.mxu0 }
  0xe7   :  { %v281_v59 = vmul.f32 %v275_v55, %v214_v50  ;;  %v276_v60 = vmul.f32 %v270_v56, %v216_v53  ;;  %v272_v61 = vmul.f32 0.044715, %v218_v57  ;;  %v220_v62 = vadd.f32 %v219_v58, %v103_v48 }
  0xe8   :  { %v266_v38 = vmul.f32 0.5, %v218_v57 }
  0xe9   :  { %v287_v0 = vadd.f32 %v281_v59, %v214_v50  ;;  %v282_v1 = vmul.f32 %v276_v60, %v216_v53  ;;  %v278_v3 = vmul.f32 %v272_v61, %v218_v57  ;;  %v273_v4 = vmul.f32 0.044715, %v220_v62  ;;  %v2648_v61 = vld [vmem:[%s3056_s7 + $0x48] sm:$0xff] }
  0xea   :  { %v267_v42 = vmul.f32 0.5, %v220_v62 }
  0xeb   :  { %v284_v5 = vmul.f32 %v278_v3, %v218_v57  ;;  %v279_v6 = vmul.f32 %v273_v4, %v220_v62  ;;  %v288_v7 = vadd.f32 %v282_v1, %v216_v53  ;;  %v293_v8 = vmul.f32 0.7978846, %v287_v0  ;;  %v2674_v0 = vld [vmem:[%s3056_s7 + $0x30] sm:$0xff]  ;;  %v2681_v1 = vld [vmem:[%s3056_s7 + $0x28] sm:$0xff]  ;;  %v2689_v3 = vld [vmem:[%s3056_s7 + $0x20] sm:$0xff] }
  0xec   :  { %v2698_v4 = vld [vmem:[%s3056_s7 + $0x18] sm:$0xff] }
  0xed   :  { %v290_v9 = vadd.f32 %v284_v5, %v218_v57  ;;  %v285_v10 = vmul.f32 %v279_v6, %v220_v62  ;;  %v294_v12 = vmul.f32 0.7978846, %v288_v7  ;;  %v2710_v5 = vld [vmem:[%s3056_s7 + $0x10] sm:$0xff]  ;;  %v2719_v6 = vld [vmem:[%s3056_s7 + $0x8] sm:$0xff]  ;;  %v2728_v7 = vld [vmem:[%s3056_s7] sm:$0xff] }
  0xef   :  { %v296_v13 = vmul.f32 0.7978846, %v290_v9  ;;  %v291_v14 = vadd.f32 %v285_v10, %v220_v62  ;;  %2337 = vtanh.f32 %v294_v12  ;;  %v2656_v62 = vld [vmem:[%s3056_s7 + $0x40] sm:$0xff] }
  0xf0   :  { %2339 = vtanh.f32 %v293_v8  ;;  %v256_v15 = vpop.f32.mrf.mxu0 }
  0xf1   :  { %2341 = vtanh.f32 %v296_v13  ;;  %v257_v16 = vadd.f32 %v256_v15, %v107_v11  ;;  %v297_v17 = vmul.f32 0.7978846, %v291_v14  ;;  %v1762_v13 = vld [vmem:[%s3058_s24] ss:$0 sm:$0xff] }
  0xf2   :  { %v2006_v18 = vpop.f32.mrf.mxu0 }
  0xf3   :  { %v271_v19 = vmul.f32 0.044715, %v257_v16  ;;  %2343 = vtanh.f32 %v297_v17  ;;  %v265_v55 = vmul.f32 0.5, %v257_v16 }
  0xf4   :  { %v259_v20 = vpop.f32.mrf.mxu0 }
  0xf5   :  { %v277_v21 = vmul.f32 %v271_v19, %v257_v16  ;;  %v260_v22 = vadd.f32 %v259_v20, %v107_v11 }
  0xf6   :  { %v2007_v23 = vpop.f32.mrf.mxu0 }
  0xf7   :  { %v283_v24 = vmul.f32 %v277_v21, %v257_v16  ;;  %v274_v25 = vmul.f32 0.044715, %v260_v22  ;;  %v268_v56 = vmul.f32 0.5, %v260_v22 }
  0xf9   :  { %v280_v26 = vmul.f32 %v274_v25, %v260_v22  ;;  %v289_v27 = vadd.f32 %v283_v24, %v257_v16  ;;  %v2309_v25 = vld [vmem:[%s3059_s29 + $0x28] sm:$0xff]  }
  0xfb   :  { %v286_v28 = vmul.f32 %v280_v26, %v260_v22  ;;  %v295_v29 = vmul.f32 0.7978846, %v289_v27  ;;  %v2310_v26 = vld [vmem:[%s3059_s29 + $0x20] sm:$0xff]   ;;  %v2311_v27 = vld [vmem:[%s3059_s29 + $0x18] sm:$0xff]  }
  0xfc   :  { %v2338_v30 = vpop.eup %2337 }
  0xfd   :  { %v2340_v31 = vpop.eup %2339  ;;  %v292_v32 = vadd.f32 %v286_v28, %v260_v22  ;;  %2345 = vtanh.f32 %v295_v29  ;;  %v306_v34 = vadd.f32 1.0, %v2338_v30  ;;  %v2312_v28 = vld [vmem:[%s3059_s29 + $0x10] sm:$0xff]   ;;  %v2313_v29 = vld [vmem:[%s3059_s29 + $0x8] sm:$0xff]   ;;  %v2314_v30 = vld [vmem:[%s3059_s29] sm:$0xff]  }
  0xfe   :  { %v2342_v33 = vpop.eup %2341  ;;  %v305_v39 = vadd.f32 1.0, %v2340_v31 }
  0xff   :  { %v308_v35 = vadd.f32 1.0, %v2342_v33  ;;  %v298_v36 = vmul.f32 0.7978846, %v292_v32  ;;  %v312_v46 = vmul.f32 %v306_v34, %v264_v40 }
 0x100   :  { %v2344_v37 = vpop.eup %2343  ;;  %v311_v48 = vmul.f32 %v305_v39, %v263_v44 }
 0x101   :  { %v309_v43 = vadd.f32 1.0, %v2344_v37  ;;  %2347 = vtanh.f32 %v298_v36  ;;  %v314_v45 = vmul.f32 %v308_v35, %v266_v38 }
 0x103   :  { %v315_v47 = vmul.f32 %v309_v43, %v267_v42  ;;  %v317_v51 = vpack.c.bf16 %v314_v45, %v311_v48 }
 0x105   :  { %v318_v49 = vpack.c.bf16 %v315_v47, %v312_v46  ;;  %v1791_v46 = vld [vmem:[%s3060_s27] ss:$0 sm:$0xff] }
 0x107   :  { %551 = vmatprep.mubr.bf16.mxu0 %v318_v49 }
 0x108   :  { %552 = vmatmul.mubr.bf16.vlgmr.msra.gmra.mxu0 %v317_v51 }
 0x109   :  { %2029 = vmatpush3.msra.mxu0 %v2627_v41 }
 0x10a   :  { %v2346_v53 = vpop.eup %2345  ;;  %2030 = vmatprep.subr.mxu0 %v2637_v52 }
 0x10b   :  { %2031 = vmatpush3.msra.mxu0 %v2637_v52  ;;  %v307_v50 = vadd.f32 1.0, %v2346_v53 }
 0x10c   :  { %2032 = vmatprep.subr.mxu0 %v2648_v61 }
 0x10d   :  { %v313_v58 = vmul.f32 %v307_v50, %v265_v55  ;;  %2033 = vmatpush3.msra.mxu0 %v2648_v61  ;;  %v1792_v50 = vld [vmem:[%s3024_s8] ss:$0 sm:$0xff] }
 0x10e   :  { %v2348_v54 = vpop.eup %2347  ;;  %2034 = vmatprep.subr.mxu0 %v2656_v62 }
 0x10f   :  { %v310_v57 = vadd.f32 1.0, %v2348_v54  ;;  %2035 = vmatpush3.msra.mxu0 %v2656_v62 }
 0x110   :  { %2036 = vmatprep.subr.mxu0 %v2665_v63 }
 0x111   :  { %v316_v59 = vmul.f32 %v310_v57, %v268_v56  ;;  %2037 = vmatpush3.msra.mxu0 %v2665_v63 }
 0x112   :  { %2038 = vmatprep.subr.mxu0 %v2674_v0 }
 0x113   :  { %v319_v60 = vpack.c.bf16 %v316_v59, %v313_v58  ;;  %2039 = vmatpush3.msra.mxu0 %v2674_v0  ;;  %v2315_v58 = vld [vmem:[%s3025_s11 + $0x28] sm:$0xff]   ;;  %v2316_v59 = vld [vmem:[%s3025_s11 + $0x20] sm:$0xff]  }
 0x114   :  { %2040 = vmatprep.subr.mxu0 %v2681_v1 }
 0x115   :  { %2025 = vmatmul.mubr.bf16.vlgmr.msra.gmra.mxu1 %v319_v60  ;;  %2041 = vmatpush3.msra.mxu0 %v2681_v1  ;;  %v2317_v60 = vld [vmem:[%s3025_s11 + $0x18] sm:$0xff]  }
 0x116   :  { %2056 = vmatpush3.msra.mxu1 %v2627_v41  ;;  %2042 = vmatprep.subr.mxu0 %v2689_v3 }
 0x117   :  { %2057 = vmatprep.subr.mxu1 %v2637_v52  ;;  %2043 = vmatpush3.msra.mxu0 %v2689_v3 }
 0x118   :  { %2058 = vmatpush3.msra.mxu1 %v2637_v52  ;;  %2044 = vmatprep.subr.mxu0 %v2698_v4 }
 0x119   :  { %2059 = vmatprep.subr.mxu1 %v2648_v61  ;;  %2045 = vmatpush3.msra.mxu0 %v2698_v4 }
 0x11a   :  { %2060 = vmatpush3.msra.mxu1 %v2648_v61  ;;  %2046 = vmatprep.subr.mxu0 %v2710_v5 }
 0x11b   :  { %2061 = vmatprep.subr.mxu1 %v2656_v62  ;;  %2047 = vmatpush3.msra.mxu0 %v2710_v5 }
 0x11c   :  { %2062 = vmatpush3.msra.mxu1 %v2656_v62  ;;  %2048 = vmatprep.subr.mxu0 %v2719_v6 }
 0x11d   :  { %2063 = vmatprep.subr.mxu1 %v2665_v63  ;;  %2049 = vmatpush3.msra.mxu0 %v2719_v6 }
 0x11e   :  { %2064 = vmatpush3.msra.mxu1 %v2665_v63  ;;  %2050 = vmatprep.subr.mxu0 %v2728_v7 }
 0x11f   :  { %2065 = vmatprep.subr.mxu1 %v2674_v0  ;;  %2051 = vmatpush3.msra.mxu0 %v2728_v7 }
 0x120   :  { %2066 = vmatpush3.msra.mxu1 %v2674_v0  ;;  %2082 = vmatprep.subr.bf16.mxu0 %v2370_v2 }
 0x121   :  { %2067 = vmatprep.subr.mxu1 %v2681_v1 }
 0x122   :  { %2068 = vmatpush3.msra.mxu1 %v2681_v1 }
 0x123   :  { %2069 = vmatprep.subr.mxu1 %v2689_v3 }
 0x124   :  { %2070 = vmatpush3.msra.mxu1 %v2689_v3 }
 0x125   :  { %2071 = vmatprep.subr.mxu1 %v2698_v4 }
 0x126   :  { %2072 = vmatpush3.msra.mxu1 %v2698_v4 }
 0x127   :  { %2073 = vmatprep.subr.mxu1 %v2710_v5 }
 0x128   :  { %2074 = vmatpush3.msra.mxu1 %v2710_v5 }
 0x129   :  { %2075 = vmatprep.subr.mxu1 %v2719_v6 }
 0x12a   :  { %2076 = vmatpush3.msra.mxu1 %v2719_v6 }
 0x12b   :  { %2077 = vmatprep.subr.mxu1 %v2728_v7 }
 0x12c   :  { %2078 = vmatpush3.msra.mxu1 %v2728_v7 }
 0x12d   :  { %2098 = vmatprep.subr.bf16.mxu1 %v2370_v2 }
 0x1c8   :  { %v1864_v8 = vpop.f32.mrf.mxu0 }
 0x1ca   :  { %v1865_v9 = vpop.f32.mrf.mxu0 }
 0x1cb   :  { %v1866_v11 = vadd.f32 %v1865_v9, %v1864_v8  ;;  %v2318_v8 = vld [vmem:[%s3025_s11 + $0x10] sm:$0xff]   ;;  %v2319_v9 = vld [vmem:[%s3025_s11 + $0x8] sm:$0xff]  }
 0x1cc   :  { %v1867_v10 = vpop.f32.mrf.mxu0 }
 0x1cd   :  { %v554_v15 = vadd.f32 %v1866_v11, %v1762_v13  ;;  %v1793_v11 = vld [vmem:[%s3026_s10] ss:$0 sm:$0xff] }
 0x1ce   :  { %v1868_v12 = vpop.f32.mrf.mxu0 }
 0x1cf   :  { %v1869_v14 = vadd.f32 %v1868_v12, %v1867_v10  ;;  %v2320_v10 = vld [vmem:[%s3025_s11] sm:$0xff]  }
 0x1d1   :  { %v557_v20 = vadd.f32 %v1869_v14, %v1762_v13 }
 0x1d5   :  { %v594_v16 = vpop.f32.mrf.mxu1 }
 0x1d6   :  { %v595_v17 = vadd.f32 %v594_v16, %v554_v15 }
 0x1d7   :  { %v2026_v18 = vpop.f32.mrf.mxu1 }
 0x1d8   :  { %v695_v19 = vmul.f32 %v595_v17, %v595_v17  ;;  %2052 = vmatprep.mubr.msk.f32.mxu0 %vm613_vm2, %v595_v17 }
 0x1d9   :  { %v597_v21 = vpop.f32.mrf.mxu1 }
 0x1da   :  { %v598_v22 = vadd.f32 %v597_v21, %v557_v20  ;;  %2079 = vmatprep.mubr.msk.f32.mxu1 %vm613_vm2, %v695_v19 }
 0x1db   :  { %v2027_v23 = vpop.f32.mrf.mxu1 }
 0x1dc   :  { %v696_v24 = vmul.f32 %v598_v22, %v598_v22  ;;  %2053 = vmatmul.mubr.msk.f32.vlgmr.msra.gmra.mxu0 %vm613_vm2, %v598_v22 }
 0x1dd   :  { %2094 = vmatprep.mubr.msk.bf16.mxu0 %vm2371_vm0, %v2370_v2  ;;  %2083 = vmatpush3.bf16.msra.mxu0 %v2309_v25 }
 0x1de   :  { %2080 = vmatmul.mubr.msk.f32.vlgmr.msra.gmra.mxu1 %vm613_vm2, %v696_v24  ;;  %2084 = vmatprep.subr.bf16.mxu0 %v2370_v2 }
 0x1df   :  { %2110 = vmatprep.mubr.msk.bf16.mxu1 %vm2371_vm0, %v2370_v2  ;;  %2099 = vmatpush3.bf16.msra.mxu1 %v2315_v58  ;;  %v1813_v58 = vld [vmem:[%s3029_s13] ss:$0 sm:$0xff] }
 0x1e0   :  { %2100 = vmatprep.subr.bf16.mxu1 %v2370_v2 }
 0x1e1   :  { %2085 = vmatpush3.bf16.msra.mxu0 %v2310_v26 }
 0x1e2   :  { %2086 = vmatprep.subr.bf16.mxu0 %v2370_v2 }
 0x1e3   :  { %2101 = vmatpush3.bf16.msra.mxu1 %v2316_v59 }
 0x1e4   :  { %2102 = vmatprep.subr.bf16.mxu1 %v2370_v2 }
 0x1e5   :  { %2087 = vmatpush3.bf16.msra.mxu0 %v2311_v27 }
 0x1e6   :  { %2088 = vmatprep.subr.bf16.mxu0 %v2370_v2 }
 0x1e7   :  { %2103 = vmatpush3.bf16.msra.mxu1 %v2317_v60 }
 0x1e8   :  { %2104 = vmatprep.subr.bf16.mxu1 %v2370_v2 }
 0x1e9   :  { %2089 = vmatpush3.bf16.msra.mxu0 %v2312_v28 }
 0x1ea   :  { %2090 = vmatprep.subr.bf16.mxu0 %v2370_v2 }
 0x1eb   :  { %2105 = vmatpush3.bf16.msra.mxu1 %v2318_v8 }
 0x1ec   :  { %2106 = vmatprep.subr.bf16.mxu1 %v2370_v2 }
 0x1ed   :  { %2091 = vmatpush3.bf16.msra.mxu0 %v2313_v29 }
 0x1ee   :  { %2092 = vmatprep.subr.bf16.mxu0 %v2370_v2 }
 0x1ef   :  { %2107 = vmatpush3.bf16.msra.mxu1 %v2319_v9 }
 0x1f0   :  { %2108 = vmatprep.subr.bf16.mxu1 %v2370_v2 }
 0x1f1   :  { %2093 = vmatpush3.bf16.msra.mxu0 %v2314_v30 }
 0x1f2   :  { %2114 = vmatprep.subr.mxu0 %v2627_v41 }
 0x1f3   :  { %2109 = vmatpush3.bf16.msra.mxu1 %v2320_v10 }
 0x1f4   :  { %2141 = vmatprep.subr.mxu1 %v2627_v41 }
 0x29c   :  { %v2054_v31 = vpop.f32.mrf.mxu0 }
 0x29d   :  { %v779_v32 = vmul.f32 %v2054_v31, %v2054_v31  ;;  %v785_v44 = vsub.f32 %v598_v22, %v2054_v31 }
 0x29e   :  { %v686_v33 = vpop.f32.mrf.mxu0  ;;  %v2081_v34 = vpop.f32.mrf.mxu1 }
 0x29f   :  { %v778_v35 = vmul.f32 %v686_v33, %v686_v33  ;;  %v781_v36 = vsub.f32 %v2081_v34, %v779_v32  ;;  %v784_v47 = vsub.f32 %v595_v17, %v686_v33 }
 0x2a0   :  { %v769_v37 = vpop.f32.mrf.mxu1 }
 0x2a1   :  { %v783_v38 = vmax.f32 %v781_v36, 0.0  ;;  %v780_v39 = vsub.f32 %v769_v37, %v778_v35  ;;  %v2322_v37 = vld [vmem:[%s3028_s15 + $0x20] sm:$0xff]  }
 0x2a3   :  { %v787_v40 = vadd.f32 1e-05, %v783_v38  ;;  %v782_v42 = vmax.f32 %v780_v39, 0.0  ;;  %v2323_v38 = vld [vmem:[%s3028_s15 + $0x18] sm:$0xff]   ;;  %v2324_v39 = vld [vmem:[%s3028_s15 + $0x10] sm:$0xff]  }
 0x2a5   :  { %2349 = vrsqrt.f32 %v787_v40  ;;  %v786_v43 = vadd.f32 1e-05, %v782_v42  ;;  %v2325_v40 = vld [vmem:[%s3028_s15 + $0x8] sm:$0xff]   ;;  %v2326_v42 = vld [vmem:[%s3028_s15] sm:$0xff]  }
 0x2a7   :  { %2351 = vrsqrt.f32 %v786_v43 }
 0x2b2   :  { %v2350_v45 = vpop.eup %2349 }
 0x2b3   :  { %v791_v48 = vmul.f32 %v2350_v45, %v785_v44 }
 0x2b4   :  { %v2352_v49 = vpop.eup %2351 }
 0x2b5   :  { %v790_v51 = vmul.f32 %v2352_v49, %v784_v47  ;;  %v800_v53 = vmul.f32 %v1791_v46, %v791_v48 }
 0x2b7   :  { %v799_v54 = vmul.f32 %v1791_v46, %v790_v51  ;;  %v2780_v56 = vadd.f32 %v1792_v50, %v800_v53 }
 0x2b9   :  { %v2778_v55 = vadd.f32 %v1792_v50, %v799_v54 }
 0x2bb   :  { %v810_v57 = vpack.c.bf16 %v2780_v56, %v2778_v55 }
 0x2bd   :  { %2095 = vmatmul.mubr.msk.bf16.vlgmr.msra.gmra.mxu0 %vm613_vm2, %v810_v57 }
 0x2be   :  { %2115 = vmatpush3.msra.mxu0 %v2627_v41 }
 0x2bf   :  { %2116 = vmatprep.subr.mxu0 %v2637_v52 }
 0x2c0   :  { %2117 = vmatpush3.msra.mxu0 %v2637_v52 }
 0x2c1   :  { %2118 = vmatprep.subr.mxu0 %v2648_v61 }
 0x2c2   :  { %2119 = vmatpush3.msra.mxu0 %v2648_v61 }
 0x2c3   :  { %2120 = vmatprep.subr.mxu0 %v2656_v62 }
 0x2c4   :  { %2121 = vmatpush3.msra.mxu0 %v2656_v62 }
 0x2c5   :  { %2122 = vmatprep.subr.mxu0 %v2665_v63 }
 0x2c6   :  { %2123 = vmatpush3.msra.mxu0 %v2665_v63 }
 0x2c7   :  { %2124 = vmatprep.subr.mxu0 %v2674_v0 }
 0x2c8   :  { %2125 = vmatpush3.msra.mxu0 %v2674_v0 }
 0x2c9   :  { %2126 = vmatprep.subr.mxu0 %v2681_v1 }
 0x2ca   :  { %2127 = vmatpush3.msra.mxu0 %v2681_v1 }
 0x2cb   :  { %2128 = vmatprep.subr.mxu0 %v2689_v3 }
 0x2cc   :  { %2129 = vmatpush3.msra.mxu0 %v2689_v3 }
 0x2cd   :  { %2130 = vmatprep.subr.mxu0 %v2698_v4 }
 0x2ce   :  { %2131 = vmatpush3.msra.mxu0 %v2698_v4 }
 0x2cf   :  { %2132 = vmatprep.subr.mxu0 %v2710_v5 }
 0x2d0   :  { %2133 = vmatpush3.msra.mxu0 %v2710_v5 }
 0x2d1   :  { %2134 = vmatprep.subr.mxu0 %v2719_v6 }
 0x2d2   :  { %2135 = vmatpush3.msra.mxu0 %v2719_v6 }
 0x2d3   :  { %2136 = vmatprep.subr.mxu0 %v2728_v7 }
 0x2d4   :  { %2137 = vmatpush3.msra.mxu0 %v2728_v7 }
 0x2d5   :  { %2168 = vmatprep.subr.bf16.mxu0 %v2370_v2 }
 0x37d   :  { %v903_v12 = vpop.f32.mrf.mxu0 }
 0x37e   :  { %v904_v13 = vadd.f32 %v1793_v11, %v903_v12 }
 0x37f   :  { %v2096_v14 = vpop.f32.mrf.mxu0 }
 0x380   :  { %v912_v15 = vmul.f32 0.044715, %v904_v13  ;;  %v910_v31 = vmul.f32 0.5, %v904_v13 }
 0x381   :  { %v906_v16 = vpop.f32.mrf.mxu0 }
 0x382   :  { %v914_v17 = vmul.f32 %v912_v15, %v904_v13  ;;  %v907_v18 = vadd.f32 %v1793_v11, %v906_v16  ;;  %v1814_v11 = vld [vmem:[%s3030_s14] ss:$0 sm:$0xff]  ;;  %v2327_v16 = vld [vmem:[%s3031_s17 + $0x18] sm:$0xff]  }
 0x383   :  { %v2097_v19 = vpop.f32.mrf.mxu0 }
 0x384   :  { %v916_v20 = vmul.f32 %v914_v17, %v904_v13  ;;  %v913_v21 = vmul.f32 0.044715, %v907_v18  ;;  %v911_v32 = vmul.f32 0.5, %v907_v18  ;;  %v2328_v17 = vld [vmem:[%s3031_s17 + $0x10] sm:$0xff]   ;;  %v2330_v19 = vld [vmem:[%s3031_s17] sm:$0xff]  }
 0x386   :  { %v918_v22 = vadd.f32 %v916_v20, %v904_v13  ;;  %v915_v23 = vmul.f32 %v913_v21, %v907_v18  ;;  %v1445_v20 = vld [vmem:[%s3032_s2 + $0x58] sm:$0xff]  ;;  %v1444_v21 = vld [vmem:[%s3032_s2 + $0x50] sm:$0xff] }
 0x388   :  { %v920_v24 = vmul.f32 0.7978846, %v918_v22  ;;  %v917_v25 = vmul.f32 %v915_v23, %v907_v18  ;;  %v1443_v22 = vld [vmem:[%s3032_s2 + $0x48] sm:$0xff]  ;;  %v1442_v23 = vld [vmem:[%s3032_s2 + $0x40] sm:$0xff] }
 0x38a   :  { %2353 = vtanh.f32 %v920_v24  ;;  %v919_v26 = vadd.f32 %v917_v25, %v907_v18  ;;  %v2329_v18 = vld [vmem:[%s3031_s17 + $0x8] sm:$0xff]   ;;  %v1441_v24 = vld [vmem:[%s3032_s2 + $0x38] sm:$0xff]  ;;  %v1440_v25 = vld [vmem:[%s3032_s2 + $0x30] sm:$0xff] }
 0x38c   :  { %v921_v27 = vmul.f32 0.7978846, %v919_v26  ;;  %v1439_v26 = vld [vmem:[%s3032_s2 + $0x28] sm:$0xff] }
 0x38e   :  { %2355 = vtanh.f32 %v921_v27  ;;  %v1438_v27 = vld [vmem:[%s3032_s2 + $0x20] sm:$0xff] }
 0x397   :  { %v2354_v28 = vpop.eup %2353 }
 0x398   :  { %v924_v29 = vadd.f32 1.0, %v2354_v28  ;;  %v1815_v28 = vld [vmem:[%s3033_s16] ss:$0 sm:$0xff] }
 0x39a   :  { %v926_v34 = vmul.f32 %v924_v29, %v910_v31 }
 0x39b   :  { %v2356_v30 = vpop.eup %2355 }
 0x39c   :  { %v925_v33 = vadd.f32 1.0, %v2356_v30 }
 0x39e   :  { %v927_v35 = vmul.f32 %v925_v33, %v911_v32 }
 0x3a0   :  { %v928_v36 = vpack.c.bf16 %v927_v35, %v926_v34 }
 0x3a2   :  { %2111 = vmatmul.mubr.msk.bf16.vlgmr.msra.gmra.mxu1 %vm613_vm2, %v928_v36 }
 0x3a3   :  { %2142 = vmatpush3.msra.mxu1 %v2627_v41 }
 0x3a4   :  { %2143 = vmatprep.subr.mxu1 %v2637_v52 }
 0x3a5   :  { %2144 = vmatpush3.msra.mxu1 %v2637_v52  ;;  %v1808_v52 = vld [vmem:[%s3027_s12] ss:$0 sm:$0xff] }
 0x3a6   :  { %2145 = vmatprep.subr.mxu1 %v2648_v61 }
 0x3a7   :  { %2146 = vmatpush3.msra.mxu1 %v2648_v61 }
 0x3a8   :  { %2147 = vmatprep.subr.mxu1 %v2656_v62 }
 0x3a9   :  { %2148 = vmatpush3.msra.mxu1 %v2656_v62 }
 0x3aa   :  { %2149 = vmatprep.subr.mxu1 %v2665_v63 }
 0x3ab   :  { %2150 = vmatpush3.msra.mxu1 %v2665_v63 }
 0x3ac   :  { %2151 = vmatprep.subr.mxu1 %v2674_v0 }
 0x3ad   :  { %2152 = vmatpush3.msra.mxu1 %v2674_v0 }
 0x3ae   :  { %2153 = vmatprep.subr.mxu1 %v2681_v1 }
 0x3af   :  { %2154 = vmatpush3.msra.mxu1 %v2681_v1 }
 0x3b0   :  { %2155 = vmatprep.subr.mxu1 %v2689_v3 }
 0x3b1   :  { %2156 = vmatpush3.msra.mxu1 %v2689_v3 }
 0x3b2   :  { %2157 = vmatprep.subr.mxu1 %v2698_v4 }
 0x3b3   :  { %2158 = vmatpush3.msra.mxu1 %v2698_v4 }
 0x3b4   :  { %2159 = vmatprep.subr.mxu1 %v2710_v5 }
 0x3b5   :  { %2160 = vmatpush3.msra.mxu1 %v2710_v5 }
 0x3b6   :  { %2161 = vmatprep.subr.mxu1 %v2719_v6 }
 0x3b7   :  { %2162 = vmatpush3.msra.mxu1 %v2719_v6 }
 0x3b8   :  { %2163 = vmatprep.subr.mxu1 %v2728_v7 }
 0x3b9   :  { %2164 = vmatpush3.msra.mxu1 %v2728_v7  ;;  %v2321_v7 = vld [vmem:[%s3028_s15 + $0x28] sm:$0xff]  }
 0x3ba   :  { %2184 = vmatprep.subr.bf16.mxu1 %v2370_v2 }
 0x462   :  { %v1014_v41 = vpop.f32.mrf.mxu1 }
 0x463   :  { %v1021_v61 = vadd.f32 %v1014_v41, %v2778_v55 }
 0x464   :  { %v2112_v62 = vpop.f32.mrf.mxu1 }
 0x465   :  { %v1030_v63 = vadd.f32 %v1808_v52, %v1021_v61 }
 0x466   :  { %v1017_v0 = vpop.f32.mrf.mxu1 }
 0x467   :  { %v1113_v1 = vmul.f32 %v1030_v63, %v1030_v63  ;;  %v1022_v3 = vadd.f32 %v1017_v0, %v2780_v56  ;;  %2138 = vmatprep.mubr.msk.f32.mxu0 %vm613_vm2, %v1030_v63 }
 0x468   :  { %v2113_v4 = vpop.f32.mrf.mxu1 }
 0x469   :  { %v1031_v5 = vadd.f32 %v1808_v52, %v1022_v3  ;;  %2165 = vmatprep.mubr.msk.f32.mxu1 %vm613_vm2, %v1113_v1 }
 0x46b   :  { %v1114_v6 = vmul.f32 %v1031_v5, %v1031_v5  ;;  %2139 = vmatmul.mubr.msk.f32.vlgmr.msra.gmra.mxu0 %vm613_vm2, %v1031_v5 }
 0x46c   :  { %2180 = vmatprep.mubr.msk.bf16.mxu0 %vm2371_vm0, %v2370_v2  ;;  %2169 = vmatpush3.bf16.msra.mxu0 %v2321_v7 }
 0x46d   :  { %2166 = vmatmul.mubr.msk.f32.vlgmr.msra.gmra.mxu1 %vm613_vm2, %v1114_v6  ;;  %2170 = vmatprep.subr.bf16.mxu0 %v2370_v2 }
 0x46e   :  { %2192 = vmatprep.mubr.msk.bf16.mxu1 %vm2371_vm0, %v2370_v2  ;;  %2185 = vmatpush3.bf16.msra.mxu1 %v2327_v16 }
 0x46f   :  { %2186 = vmatprep.subr.bf16.mxu1 %v2370_v2 }
 0x470   :  { %2171 = vmatpush3.bf16.msra.mxu0 %v2322_v37 }
 0x471   :  { %2172 = vmatprep.subr.bf16.mxu0 %v2370_v2 }
 0x472   :  { %2187 = vmatpush3.bf16.msra.mxu1 %v2328_v17 }
 0x473   :  { %2188 = vmatprep.subr.bf16.mxu1 %v2370_v2 }
 0x474   :  { %2173 = vmatpush3.bf16.msra.mxu0 %v2323_v38 }
 0x475   :  { %2174 = vmatprep.subr.bf16.mxu0 %v2370_v2 }
 0x476   :  { %2189 = vmatpush3.bf16.msra.mxu1 %v2329_v18 }
 0x477   :  { %2190 = vmatprep.subr.bf16.mxu1 %v2370_v2 }
 0x478   :  { %2175 = vmatpush3.bf16.msra.mxu0 %v2324_v39 }
 0x479   :  { %2176 = vmatprep.subr.bf16.mxu0 %v2370_v2 }
 0x47a   :  { %2191 = vmatpush3.bf16.msra.mxu1 %v2330_v19 }
 0x47b   :  { %2196 = vmatprep.subr.mxu1 %v1445_v20 }
 0x47c   :  { %2177 = vmatpush3.bf16.msra.mxu0 %v2325_v40 }
 0x47d   :  { %2178 = vmatprep.subr.bf16.mxu0 %v2370_v2 }
 0x480   :  { %2179 = vmatpush3.bf16.msra.mxu0 %v2326_v42 }
 0x481   :  { %2223 = vmatprep.subr.mxu0 %v1445_v20 }
 0x52b   :  { %v2140_v43 = vpop.f32.mrf.mxu0 }
 0x52c   :  { %v1197_v44 = vmul.f32 %v2140_v43, %v2140_v43  ;;  %v1203_v56 = vsub.f32 %v1031_v5, %v2140_v43  ;;  %v1437_v43 = vld [vmem:[%s3032_s2 + $0x18] sm:$0xff] }
 0x52d   :  { %v1104_v45 = vpop.f32.mrf.mxu0  ;;  %v2167_v46 = vpop.f32.mrf.mxu1 }
 0x52e   :  { %v1196_v47 = vmul.f32 %v1104_v45, %v1104_v45  ;;  %v1199_v48 = vsub.f32 %v2167_v46, %v1197_v44  ;;  %v1202_v59 = vsub.f32 %v1030_v63, %v1104_v45  ;;  %v1436_v44 = vld [vmem:[%s3032_s2 + $0x10] sm:$0xff]  ;;  %v1435_v45 = vld [vmem:[%s3032_s2 + $0x8] sm:$0xff]  ;;  %v1434_v46 = vld [vmem:[%s3032_s2] sm:$0xff] }
 0x52f   :  { %v1187_v49 = vpop.f32.mrf.mxu1 }
 0x530   :  { %v1201_v51 = vmax.f32 %v1199_v48, 0.0  ;;  %v1198_v53 = vsub.f32 %v1187_v49, %v1196_v47  ;;  %v1828_v48 = vld [vmem:[%s3034_s18] ss:$0 sm:$0xff] }
 0x532   :  { %v1205_v50 = vadd.f32 1e-05, %v1201_v51  ;;  %v1200_v54 = vmax.f32 %v1198_v53, 0.0 }
 0x534   :  { %2357 = vrsqrt.f32 %v1205_v50  ;;  %v1204_v55 = vadd.f32 1e-05, %v1200_v54 }
 0x536   :  { %2359 = vrsqrt.f32 %v1204_v55 }
 0x541   :  { %v2358_v57 = vpop.eup %2357 }
 0x542   :  { %v1209_v60 = vmul.f32 %v2358_v57, %v1203_v56 }
 0x543   :  { %v2360_v8 = vpop.eup %2359 }
 0x544   :  { %v1208_v9 = vmul.f32 %v2360_v8, %v1202_v59  ;;  %v1218_v10 = vmul.f32 %v1813_v58, %v1209_v60  ;;  %v2331_v59 = vld [vmem:[%s3035_s21 + $0x28] sm:$0xff]   ;;  %v2332_v60 = vld [vmem:[%s3035_s21 + $0x20] sm:$0xff]   ;;  %v2333_v8 = vld [vmem:[%s3035_s21 + $0x18] sm:$0xff]  }
 0x546   :  { %v1217_v12 = vmul.f32 %v1813_v58, %v1208_v9  ;;  %v2905_v14 = vadd.f32 %v1814_v11, %v1218_v10  ;;  %v2334_v9 = vld [vmem:[%s3035_s21 + $0x10] sm:$0xff]   ;;  %v2335_v10 = vld [vmem:[%s3035_s21 + $0x8] sm:$0xff]  }
 0x548   :  { %v2903_v13 = vadd.f32 %v1814_v11, %v1217_v12  ;;  %v2336_v11 = vld [vmem:[%s3035_s21] sm:$0xff]  }
 0x54a   :  { %v1228_v15 = vpack.c.bf16 %v2905_v14, %v2903_v13 }
 0x54c   :  { %2181 = vmatmul.mubr.msk.bf16.vlgmr.msra.gmra.mxu0 %vm613_vm2, %v1228_v15 }
 0x54d   :  { %2224 = vmatpush3.msra.mxu0 %v1445_v20 }
 0x54e   :  { %2225 = vmatprep.subr.mxu0 %v1444_v21 }
 0x54f   :  { %2226 = vmatpush3.msra.mxu0 %v1444_v21 }
 0x550   :  { %2227 = vmatprep.subr.mxu0 %v1443_v22 }
 0x551   :  { %2228 = vmatpush3.msra.mxu0 %v1443_v22 }
 0x552   :  { %2229 = vmatprep.subr.mxu0 %v1442_v23 }
 0x553   :  { %2230 = vmatpush3.msra.mxu0 %v1442_v23 }
 0x554   :  { %2231 = vmatprep.subr.mxu0 %v1441_v24 }
 0x555   :  { %2232 = vmatpush3.msra.mxu0 %v1441_v24 }
 0x556   :  { %2233 = vmatprep.subr.mxu0 %v1440_v25 }
 0x557   :  { %2234 = vmatpush3.msra.mxu0 %v1440_v25 }
 0x558   :  { %2235 = vmatprep.subr.mxu0 %v1439_v26 }
 0x559   :  { %2236 = vmatpush3.msra.mxu0 %v1439_v26 }
 0x55a   :  { %2237 = vmatprep.subr.mxu0 %v1438_v27 }
 0x55b   :  { %2238 = vmatpush3.msra.mxu0 %v1438_v27 }
 0x55c   :  { %2239 = vmatprep.subr.mxu0 %v1437_v43 }
 0x55d   :  { %2240 = vmatpush3.msra.mxu0 %v1437_v43 }
 0x55e   :  { %2241 = vmatprep.subr.mxu0 %v1436_v44 }
 0x55f   :  { %2242 = vmatpush3.msra.mxu0 %v1436_v44 }
 0x560   :  { %2243 = vmatprep.subr.mxu0 %v1435_v45 }
 0x561   :  { %2244 = vmatpush3.msra.mxu0 %v1435_v45 }
 0x562   :  { %2245 = vmatprep.subr.mxu0 %v1434_v46 }
 0x563   :  { %2246 = vmatpush3.msra.mxu0 %v1434_v46 }
 0x60c   :  { %v1321_v29 = vpop.f32.mrf.mxu0 }
 0x60d   :  { %v1322_v30 = vadd.f32 %v1815_v28, %v1321_v29 }
 0x60e   :  { %v2182_v31 = vpop.f32.mrf.mxu0 }
 0x60f   :  { %v1330_v32 = vmul.f32 0.044715, %v1322_v30  ;;  %v1328_v7 = vmul.f32 0.5, %v1322_v30  ;;  %v1834_v31 = vld [vmem:[%s3037_s20] ss:$0 sm:$0xff] }
 0x610   :  { %v1324_v33 = vpop.f32.mrf.mxu0 }
 0x611   :  { %v1332_v34 = vmul.f32 %v1330_v32, %v1322_v30  ;;  %v1325_v35 = vadd.f32 %v1815_v28, %v1324_v33 }
 0x612   :  { %v2183_v36 = vpop.f32.mrf.mxu0 }
 0x613   :  { %v1334_v41 = vmul.f32 %v1332_v34, %v1322_v30  ;;  %v1331_v52 = vmul.f32 0.044715, %v1325_v35  ;;  %v1329_v37 = vmul.f32 0.5, %v1325_v35  ;;  %v1835_v36 = vld [vmem:[%s3038_s22] ss:$0 sm:$0xff] }
 0x615   :  { %v1336_v61 = vadd.f32 %v1334_v41, %v1322_v30  ;;  %v1333_v62 = vmul.f32 %v1331_v52, %v1325_v35 }
 0x617   :  { %v1338_v63 = vmul.f32 0.7978846, %v1336_v61  ;;  %v1335_v0 = vmul.f32 %v1333_v62, %v1325_v35 }
 0x619   :  { %2361 = vtanh.f32 %v1338_v63  ;;  %v1337_v1 = vadd.f32 %v1335_v0, %v1325_v35 }
 0x61b   :  { %v1339_v3 = vmul.f32 0.7978846, %v1337_v1 }
 0x61d   :  { %2363 = vtanh.f32 %v1339_v3 }
 0x626   :  { %v2362_v4 = vpop.eup %2361 }
 0x627   :  { %v1342_v5 = vadd.f32 1.0, %v2362_v4 }
 0x629   :  { %v1344_v39 = vmul.f32 %v1342_v5, %v1328_v7 }
 0x62a   :  { %v2364_v6 = vpop.eup %2363 }
 0x62b   :  { %v1343_v38 = vadd.f32 1.0, %v2364_v6 }
 0x62d   :  { %v1345_v40 = vmul.f32 %v1343_v38, %v1329_v37 }
 0x62f   :  { %v1346_v42 = vpack.c.bf16 %v1345_v40, %v1344_v39 }
 0x631   :  { %2193 = vmatmul.mubr.msk.bf16.vlgmr.msra.gmra.mxu1 %vm175_vm1, %v1346_v42 }
 0x632   :  { %2197 = vmatpush3.msra.mxu1 %v1445_v20 }
 0x633   :  { %2198 = vmatprep.subr.mxu1 %v1444_v21 }
 0x634   :  { %2199 = vmatpush3.msra.mxu1 %v1444_v21 }
 0x635   :  { %2200 = vmatprep.subr.mxu1 %v1443_v22 }
 0x636   :  { %2201 = vmatpush3.msra.mxu1 %v1443_v22 }
 0x637   :  { %2202 = vmatprep.subr.mxu1 %v1442_v23 }
 0x638   :  { %2203 = vmatpush3.msra.mxu1 %v1442_v23 }
 0x639   :  { %2204 = vmatprep.subr.mxu1 %v1441_v24 }
 0x63a   :  { %2205 = vmatpush3.msra.mxu1 %v1441_v24 }
 0x63b   :  { %2206 = vmatprep.subr.mxu1 %v1440_v25 }
 0x63c   :  { %2207 = vmatpush3.msra.mxu1 %v1440_v25 }
 0x63d   :  { %2208 = vmatprep.subr.mxu1 %v1439_v26 }
 0x63e   :  { %2209 = vmatpush3.msra.mxu1 %v1439_v26 }
 0x63f   :  { %2210 = vmatprep.subr.mxu1 %v1438_v27 }
 0x640   :  { %2211 = vmatpush3.msra.mxu1 %v1438_v27 }
 0x641   :  { %2212 = vmatprep.subr.mxu1 %v1437_v43 }
 0x642   :  { %2213 = vmatpush3.msra.mxu1 %v1437_v43 }
 0x643   :  { %2214 = vmatprep.subr.mxu1 %v1436_v44 }
 0x644   :  { %2215 = vmatpush3.msra.mxu1 %v1436_v44 }
 0x645   :  { %2216 = vmatprep.subr.mxu1 %v1435_v45 }
 0x646   :  { %2217 = vmatpush3.msra.mxu1 %v1435_v45 }
 0x647   :  { %2218 = vmatprep.subr.mxu1 %v1434_v46 }
 0x648   :  { %2219 = vmatpush3.msra.mxu1 %v1434_v46 }
 0x649   :  { %2250 = vmatprep.subr.bf16.mxu1 %v2370_v2 }
 0x6f1   :  { %v1416_v47 = vpop.f32.mrf.mxu1 }
 0x6f2   :  { %v1423_v49 = vadd.f32 %v1416_v47, %v2903_v13 }
 0x6f3   :  { %v2194_v51 = vpop.f32.mrf.mxu1 }
 0x6f4   :  { %v1432_v53 = vadd.f32 %v1828_v48, %v1423_v49 }
 0x6f5   :  { %v1419_v50 = vpop.f32.mrf.mxu1 }
 0x6f6   :  { %v1527_v54 = vmul.f32 %v1432_v53, %v1432_v53  ;;  %v1424_v55 = vadd.f32 %v1419_v50, %v2905_v14  ;;  %2220 = vmatprep.mubr.msk.f32.mxu1 %vm613_vm2, %v1432_v53 }
 0x6f7   :  { %v2195_v56 = vpop.f32.mrf.mxu1 }
 0x6f8   :  { %v1433_v57 = vadd.f32 %v1828_v48, %v1424_v55  ;;  %2247 = vmatprep.mubr.msk.f32.mxu0 %vm613_vm2, %v1527_v54 }
 0x6fa   :  { %v1528_v58 = vmul.f32 %v1433_v57, %v1433_v57  ;;  %2221 = vmatmul.mubr.msk.f32.vlgmr.msra.gmra.mxu1 %vm613_vm2, %v1433_v57 }
 0x6fb   :  { %2262 = vmatprep.mubr.msk.bf16.mxu1 %vm2371_vm0, %v2370_v2  ;;  %2251 = vmatpush3.bf16.msra.mxu1 %v2331_v59 }
 0x6fc   :  { %2248 = vmatmul.mubr.msk.f32.vlgmr.msra.gmra.mxu0 %vm613_vm2, %v1528_v58  ;;  %2252 = vmatprep.subr.bf16.mxu1 %v2370_v2 }
 0x6ff   :  { %2253 = vmatpush3.bf16.msra.mxu1 %v2332_v60 }
 0x700   :  { %2254 = vmatprep.subr.bf16.mxu1 %v2370_v2 }
 0x703   :  { %2255 = vmatpush3.bf16.msra.mxu1 %v2333_v8 }
 0x704   :  { %2256 = vmatprep.subr.bf16.mxu1 %v2370_v2 }
 0x707   :  { %2257 = vmatpush3.bf16.msra.mxu1 %v2334_v9 }
 0x708   :  { %2258 = vmatprep.subr.bf16.mxu1 %v2370_v2 }
 0x70b   :  { %2259 = vmatpush3.bf16.msra.mxu1 %v2335_v10 }
 0x70c   :  { %2260 = vmatprep.subr.bf16.mxu1 %v2370_v2  ;;  %v1833_v2 = vld [vmem:[%s3036_s19] ss:$0 sm:$0xff] }
 0x70f   :  { %2261 = vmatpush3.bf16.msra.mxu1 %v2336_v11 }
 0x7ba   :  { %v2222_v12 = vpop.f32.mrf.mxu1 }
 0x7bb   :  { %v1611_v13 = vmul.f32 %v2222_v12, %v2222_v12  ;;  %v1617_v24 = vsub.f32 %v1433_v57, %v2222_v12 }
 0x7bc   :  { %v1518_v14 = vpop.f32.mrf.mxu1  ;;  %v2249_v15 = vpop.f32.mrf.mxu0 }
 0x7bd   :  { %v1610_v16 = vmul.f32 %v1518_v14, %v1518_v14  ;;  %v1613_v17 = vsub.f32 %v2249_v15, %v1611_v13  ;;  %v1616_v26 = vsub.f32 %v1432_v53, %v1518_v14 }
 0x7be   :  { %v1601_v18 = vpop.f32.mrf.mxu0 }
 0x7bf   :  { %v1615_v19 = vmax.f32 %v1613_v17, 0.0  ;;  %v1612_v20 = vsub.f32 %v1601_v18, %v1610_v16 }
 0x7c1   :  { %v1619_v21 = vadd.f32 1e-05, %v1615_v19  ;;  %v1614_v22 = vmax.f32 %v1612_v20, 0.0 }
 0x7c3   :  { %2365 = vrsqrt.f32 %v1619_v21  ;;  %v1618_v23 = vadd.f32 1e-05, %v1614_v22 }
 0x7c5   :  { %2367 = vrsqrt.f32 %v1618_v23 }
 0x7d0   :  { %v2366_v25 = vpop.eup %2365 }
 0x7d1   :  { %v1623_v27 = vmul.f32 %v2366_v25, %v1617_v24 }
 0x7d2   :  { %v2368_v28 = vpop.eup %2367 }
 0x7d3   :  { %v1622_v29 = vmul.f32 %v2368_v28, %v1616_v26  ;;  %v1632_v30 = vmul.f32 %v1833_v2, %v1623_v27 }
 0x7d5   :  { %v1631_v32 = vmul.f32 %v1833_v2, %v1622_v29  ;;  %v1641_v34 = vadd.f32 %v1834_v31, %v1632_v30 }
 0x7d7   :  { %v1640_v33 = vadd.f32 %v1834_v31, %v1631_v32 }
 0x7d9   :  { %v1642_v35 = vpack.c.bf16 %v1641_v34, %v1640_v33 }
 0x7db   :  { %2263 = vmatmul.mubr.msk.bf16.vlgmr.msra.gmra.mxu1 %vm613_vm2, %v1642_v35 }
 0x89b   :  { %v1735_v41 = vpop.f32.mrf.mxu1 }
 0x89c   :  { %v1736_v52 = vadd.f32 %v1835_v36, %v1735_v41 }
 0x89d   :  { %v2264_v61 = vpop.f32.mrf.mxu1 }
 0x89e   :  { %1742 = vst [vmem:[%s3039_s23] sm:$0xff] %v1736_v52 }
 0x89f   :  { %v1738_v62 = vpop.f32.mrf.mxu1 }
 0x8a0   :  { %v1739_v63 = vadd.f32 %v1835_v36, %v1738_v62 }
 0x8a1   :  { %v2265_v0 = vpop.f32.mrf.mxu1 }
 0x8a2   :  { %1743 = vst [vmem:[%s3039_s23 + $0x8] sm:$0xff] %v1739_v63 }

</bundles_post_ra>
